<compile_context>
chip_gen: v7x
topology: tpu7x:2x2x1
jax: 0.10.0
libtpu: 0.0.40
codegen_flags: <defaults>
</compile_context>

<pallas_src>
import functools

import jax
import jax.numpy as jnp
from jax import lax
from jax.experimental import pallas as pl
from jax.experimental.pallas import tpu as pltpu


# ----------------------------- kernels ------------------------------------


def _kernel_wt(x_ref, wt_ref, b_ref, o_ref):
    """x:[tm,Cin] @ wt:[Cin,Cout] + b.  Weight pre-transposed -> MXU-native
    orientation (contract lane dim of LHS against sublane dim of RHS), no
    per-step XLU transpose."""
    x = x_ref[...]
    if x.dtype != wt_ref.dtype:
        x = x.astype(wt_ref.dtype)  # bf16-weight path: bf16 MXU inputs
    acc = jnp.dot(x, wt_ref[...], preferred_element_type=jnp.float32)
    o_ref[...] = (acc + b_ref[...]).astype(o_ref.dtype)


def _kernel_w(x_ref, w_ref, b_ref, o_ref):
    """x:[M,Cin] . w:[Cout,Cin] + b.  PyTorch weight layout; used only for a
    single-step grid, so the implied RHS transpose happens exactly once."""
    x = x_ref[...]
    if x.dtype != w_ref.dtype:
        x = x.astype(w_ref.dtype)
    acc = lax.dot_general(
        x, w_ref[...],
        dimension_numbers=(((1,), (1,)), ((), ())),   # contract Cin of both
        preferred_element_type=jnp.float32)
    o_ref[...] = (acc + b_ref[...]).astype(o_ref.dtype)


def _kernel_w_ksplit(x_ref, w_ref, o_ref):
    """Partial product over one Cin shard; bias + reduction happen outside."""
    x = x_ref[...]
    if x.dtype != w_ref.dtype:
        x = x.astype(w_ref.dtype)
    o_ref[...] = lax.dot_general(
        x, w_ref[...],
        dimension_numbers=(((1,), (1,)), ((), ())),
        preferred_element_type=jnp.float32)


# ----------------------------- wrappers ------------------------------------


def _conv1x1_2d(x2d, weight, bias, *, tm=256, weight_dtype=None, split_k=1):
    """Core: channels-last x2d [M, Cin] -> [M, Cout]."""
    M, Cin = x2d.shape
    Cout = weight.shape[0]
    w2d = weight.reshape(Cout, Cin)            # PyTorch layout, no copy
    if weight_dtype is not None:
        w2d = w2d.astype(weight_dtype)
    b_row = bias.reshape(1, Cout).astype(jnp.float32)

    flops = 2 * M * Cin * Cout

    if M <= tm:
        if split_k > 1:
            # K-split matvec: each "parallel" grid step streams Cin/split_k of
            # the weight.  Intended for v7x (2 TensorCores) on the M == 1
            # module shape, where the kernel is a pure weight stream.
            assert Cin % split_k == 0 and (Cin // split_k) % 128 == 0, \
                "Cin shard must stay lane-aligned"
            ck = Cin // split_k
            bytes_accessed = (x2d.size * x2d.dtype.itemsize
                              + w2d.size * w2d.dtype.itemsize
                              + split_k * M * Cout * 4)
            partials = pl.pallas_call(
                _kernel_w_ksplit,
                out_shape=jax.ShapeDtypeStruct((split_k, M, Cout), jnp.float32),
                grid=(split_k,),
                in_specs=[
                    pl.BlockSpec((M, ck), lambda k: (0, k)),
                    pl.BlockSpec((Cout, ck), lambda k: (0, k)),
                ],
                out_specs=pl.BlockSpec((None, M, Cout), lambda k: (k, 0, 0)),
                compiler_params=pltpu.CompilerParams(
                    dimension_semantics=("parallel",)),
                cost_estimate=pl.CostEstimate(
                    flops=flops, transcendentals=0,
                    bytes_accessed=bytes_accessed),
            )(x2d, w2d)
            return (partials.sum(axis=0) + b_row).astype(x2d.dtype)

        # Single full-extent block (exempt from the (8,128) block rule).
        # Keep the PyTorch [Cout, Cin] layout: one transpose total either way,
        # and no extra wrapper HBM copy of the weight for the M == 1 matvec.
        bytes_accessed = (x2d.size * x2d.dtype.itemsize
                          + w2d.size * w2d.dtype.itemsize
                          + b_row.size * 4
                          + M * Cout * x2d.dtype.itemsize)
        return pl.pallas_call(
            _kernel_w,
            out_shape=jax.ShapeDtypeStruct((M, Cout), x2d.dtype),
            grid=(1,),
            in_specs=[
                pl.BlockSpec((M, Cin), lambda i: (0, 0)),
                pl.BlockSpec((Cout, Cin), lambda i: (0, 0)),
                pl.BlockSpec((1, Cout), lambda i: (0, 0)),
            ],
            out_specs=pl.BlockSpec((M, Cout), lambda i: (0, 0)),
            compiler_params=pltpu.CompilerParams(
                dimension_semantics=("arbitrary",)),
            cost_estimate=pl.CostEstimate(flops=flops, transcendentals=0,
                                          bytes_accessed=bytes_accessed),
        )(x2d, w2d, b_row)

    # Tiled path (grid_m > 1): pre-transpose the weight ONCE in the wrapper so
    # the in-kernel dot needs no XLU transpose on any grid step.  The single
    # 1.5 MiB (f32) / 0.75 MiB (bf16) copy is amortized over all tiles.
    assert tm % 8 == 0, "tm must be a multiple of 8 (sublane tiling)"
    w_t = w2d.T                                   # [Cin, Cout]
    grid_m = pl.cdiv(M, tm)                       # no jnp.pad: tail rows of the
    #                                               last block are masked on write
    bytes_accessed = (x2d.size * x2d.dtype.itemsize
                      + w_t.size * w_t.dtype.itemsize
                      + b_row.size * 4
                      + M * Cout * x2d.dtype.itemsize)
    return pl.pallas_call(
        _kernel_wt,
        out_shape=jax.ShapeDtypeStruct((M, Cout), x2d.dtype),
        grid=(grid_m,),
        in_specs=[
            pl.BlockSpec((tm, Cin), lambda i: (i, 0)),
            # Constant index_map -> weight/bias stay VMEM-resident across
            # steps (no re-DMA).  If tm is ever raised past ~512, single-
            # buffer these with pipeline_mode=pl.Buffered(1) to reclaim VMEM.
            pl.BlockSpec((Cin, Cout), lambda i: (0, 0)),
            pl.BlockSpec((1, Cout), lambda i: (0, 0)),
        ],
        out_specs=pl.BlockSpec((tm, Cout), lambda i: (i, 0)),
        compiler_params=pltpu.CompilerParams(
            dimension_semantics=("parallel",)),
        cost_estimate=pl.CostEstimate(flops=flops, transcendentals=0,
                                      bytes_accessed=bytes_accessed),
    )(x2d, w_t, b_row)


def conv2d_1x1_nhwc(x_nhwc, weight, bias, **kw):
    """Channels-last entry point: x [N,H,W,Cin] -> [N,H,W,Cout] (no layout
    transposes, preferred for H*W > 1)."""
    N, H, W, Cin = x_nhwc.shape
    Cout = weight.shape[0]
    out2d = _conv1x1_2d(x_nhwc.reshape(N * H * W, Cin), weight, bias, **kw)
    return out2d.reshape(N, H, W, Cout)


def conv2d_1x1(x_nchw, weight, bias, **kw):
    """PyTorch-layout wrapper: x [N,Cin,H,W], weight [Cout,Cin,1,1], bias [Cout].

    For the module's H = W = 1 shape the NCHW<->NHWC transposes below are
    degenerate reshapes (no data movement).
    # TODO(synk): for H*W > 1, have the producer/consumer use NHWC directly
    # (conv2d_1x1_nhwc) -- these two layout transposes are full HBM round
    # trips of x and out that dominate the memory-bound matmul.
    """
    N, Cin, H, W = x_nchw.shape
    out_nhwc = conv2d_1x1_nhwc(jnp.transpose(x_nchw, (0, 2, 3, 1)),
                               weight, bias, **kw)
    return jnp.transpose(out_nhwc, (0, 3, 1, 2))


# ----------------------------- tests ----------------------------------------


def _reference(x, w, b):
    Cout, Cin = w.shape[0], w.shape[1]
    return (jnp.einsum("nchw,oc->nohw", x, w.reshape(Cout, Cin))
            + b.reshape(1, Cout, 1, 1))


if __name__ == "__main__":
    key = jax.random.PRNGKey(0)
    kx, kw, kb, kx2 = jax.random.split(key, 4)

    Cin, Cout = 3072, 128
    bound = 1.0 / (Cin ** 0.5)
    w = jax.random.uniform(kw, (Cout, Cin, 1, 1), minval=-bound, maxval=bound,
                           dtype=jnp.float32)
    b = jax.random.uniform(kb, (Cout,), minval=-bound, maxval=bound,
                           dtype=jnp.float32)

    # --- Case 1: exact module shape [1, 3072, 1, 1], f32 weights ------------
    x = jax.random.normal(kx, (1, Cin, 1, 1), dtype=jnp.float32)
    conv_f32 = jax.jit(functools.partial(conv2d_1x1))
    out = jax.block_until_ready(conv_f32(x, w, b))
    assert out.shape == (1, Cout, 1, 1), out.shape
    ref = _reference(x, w, b)
    assert jnp.allclose(out, ref, atol=1e-4, rtol=1e-4), \
        float(jnp.max(jnp.abs(out - ref)))

    # --- Case 2: spatial case, tiled + pre-transposed weight, non-divisible M
    # (M = 128, tm = 48 -> grid 3, last block's tail rows masked; no jnp.pad).
    x_sp = jax.random.normal(kx2, (2, Cin, 8, 8), dtype=jnp.float32)
    conv_tiled = jax.jit(functools.partial(conv2d_1x1, tm=48))
    out_sp = jax.block_until_ready(conv_tiled(x_sp, w, b))
    assert out_sp.shape == (2, Cout, 8, 8), out_sp.shape
    ref_sp = _reference(x_sp, w, b)
    assert jnp.allclose(out_sp, ref_sp, atol=1e-4, rtol=1e-4), \
        float(jnp.max(jnp.abs(out_sp - ref_sp)))

    # --- Case 3: bf16 weight storage (halves dominant weight HBM traffic).
    # NOTE: bf16 weights AND bf16-cast activations feed the MXU (f32 accum).
    conv_bf16 = jax.jit(functools.partial(conv2d_1x1,
                                          weight_dtype=jnp.bfloat16))
    out_bf16 = jax.block_until_ready(conv_bf16(x, w, b))
    assert jnp.allclose(out_bf16, ref, atol=2e-2, rtol=2e-2), \
        float(jnp.max(jnp.abs(out_bf16 - ref)))

    # --- Case 4: split-K matvec (v7x dual-TensorCore path), correctness only.
    conv_split = jax.jit(functools.partial(conv2d_1x1, split_k=2))
    out_split = jax.block_until_ready(conv_split(x, w, b))
    assert jnp.allclose(out_split, ref, atol=1e-4, rtol=1e-4), \
        float(jnp.max(jnp.abs(out_split - ref)))

    print("KERNEL_OK")
</pallas_src>

<mosaic_0001>
module attributes {stable_mosaic.version = 11 : i64} {
  func.func @_kernel_w(%arg0: i32, %arg1: memref<1x3072xf32, #tpu.memory_space<vmem>>, %arg2: memref<128x3072xf32, #tpu.memory_space<vmem>>, %arg3: memref<1x128xf32, #tpu.memory_space<vmem>>, %arg4: memref<1x128xf32, #tpu.memory_space<vmem>>) attributes {dimension_semantics = [#tpu.dimension_semantics<arbitrary>], iteration_bounds = array<i64: 1>, scalar_prefetch = 0 : i64, scratch_operands = 0 : i64, tpu.core_type = #tpu.core_type<tc>, window_params = [{pipeline_mode = #tpu.pipeline_mode<synchronous>, transform_indices = @transform_0, window_bounds = array<i64: 1, 3072>}, {pipeline_mode = #tpu.pipeline_mode<synchronous>, transform_indices = @transform_1, window_bounds = array<i64: 128, 3072>}, {pipeline_mode = #tpu.pipeline_mode<synchronous>, transform_indices = @transform_2, window_bounds = array<i64: 1, 128>}, {pipeline_mode = #tpu.pipeline_mode<synchronous>, transform_indices = @transform_3, window_bounds = array<i64: 1, 128>}]} {
    %c0 = arith.constant 0 : index
    %c0_0 = arith.constant 0 : index
    %0 = vector.load %arg1[%c0, %c0_0] : memref<1x3072xf32, #tpu.memory_space<vmem>>, vector<1x3072xf32>
    %c0_1 = arith.constant 0 : index
    %c0_2 = arith.constant 0 : index
    %1 = vector.load %arg2[%c0_1, %c0_2] : memref<128x3072xf32, #tpu.memory_space<vmem>>, vector<128x3072xf32>
    %cst = arith.constant dense<0.000000e+00> : vector<1x128xf32>
    %2 = tpu.matmul %0, %1, %cst {dimension_numbers = #tpu.dot_dimension_numbers<[1], [1], [0], [0], [0, 0, 1, 0], [], []>} : vector<1x3072xf32>, vector<128x3072xf32>, vector<1x128xf32> -> vector<1x128xf32>
    %c0_3 = arith.constant 0 : index
    %c0_4 = arith.constant 0 : index
    %3 = vector.load %arg3[%c0_3, %c0_4] : memref<1x128xf32, #tpu.memory_space<vmem>>, vector<1x128xf32>
    %4 = arith.addf %2, %3 : vector<1x128xf32>
    %c0_5 = arith.constant 0 : index
    %c0_6 = arith.constant 0 : index
    %5 = vector.load %arg4[%c0_5, %c0_6] : memref<1x128xf32, #tpu.memory_space<vmem>>, vector<1x128xf32>
    tpu.vector_store %arg4[%c0_5, %c0_6], %4 {strides = array<i32>} : memref<1x128xf32, #tpu.memory_space<vmem>>, vector<1x128xf32>,
    return
  }
  func.func @transform_0(%arg0: i32) -> (i32, i32) {
    %c0_i32 = arith.constant 0 : i32
    %c0_i32_0 = arith.constant 0 : i32
    %c0_i32_1 = arith.constant 0 : i32
    return %c0_i32, %c0_i32_0 : i32, i32
  }
  func.func @transform_1(%arg0: i32) -> (i32, i32) {
    %c0_i32 = arith.constant 0 : i32
    %c0_i32_0 = arith.constant 0 : i32
    %c0_i32_1 = arith.constant 0 : i32
    return %c0_i32, %c0_i32_0 : i32, i32
  }
  func.func @transform_2(%arg0: i32) -> (i32, i32) {
    %c0_i32 = arith.constant 0 : i32
    %c0_i32_0 = arith.constant 0 : i32
    %c0_i32_1 = arith.constant 0 : i32
    return %c0_i32, %c0_i32_0 : i32, i32
  }
  func.func @transform_3(%arg0: i32) -> (i32, i32) {
    %c0_i32 = arith.constant 0 : i32
    %c0_i32_0 = arith.constant 0 : i32
    %c0_i32_1 = arith.constant 0 : i32
    return %c0_i32, %c0_i32_0 : i32, i32
  }
}

</mosaic_0001>

<bundles_post_ra>
// kernel: conv2d_1x1.1
= control target key start
LH: loop header
LB: loop body
LE: loop exit
PB: predicated region body
PF: predicated region fallthrough
CT: control target
= control target key end

     0   :  { %v406_v30 = vlaneseq  ;;  %s3098_s0 = inlined_call_operand.vmem [shape: f32[1,3072], index: 0, kind: input, shape index: {}]   ;;  %s3099_s1 = inlined_call_operand.vmem [shape: f32[128,3072], index: 1, kind: input, shape index: {}]   ;;  %s3100_s2 = inlined_call_operand.vmem [shape: f32[1,128], index: 2, kind: input, shape index: {}]   ;;  %s3101_s3 = inlined_call_operand.hbm [shape: f32[1,128], index: 3, kind: output, shape index: {}]  }
   0x1   :  { %v19_v0 = vld [vmem:[%s3099_s1 + $0x8] sm:$0xff]  ;;  %v18_v5 = vld [vmem:[%s3099_s1] sm:$0xff] }
   0x2   :  { %v43_v1 = vld [vmem:[%s3099_s1 + $0xc8] sm:$0xff]  ;;  %v42_v6 = vld [vmem:[%s3099_s1 + $0xc0] sm:$0xff]  ;;  %v1913_v37 = vshrl.u32 %v406_v30, 7 }
   0x3   :  { %v31_v2 = vld [vmem:[%s3099_s1 + $0x68] sm:$0xff]  ;;  %v1381_v3 = vpack.c.bf16 %v43_v1, %v19_v0  ;;  %v1383_v8 = vpack.c.bf16 %v42_v6, %v18_v5  ;;  %v30_v9 = vld [vmem:[%s3099_s1 + $0x60] sm:$0xff] }
   0x4   :  { %v55_v4 = vld [vmem:[%s3099_s1 + $0x128] sm:$0xff]  ;;  %v54_v10 = vld [vmem:[%s3099_s1 + $0x120] sm:$0xff]  ;;  %v1922_v44 = vsub.s32 1, %v1913_v37  ;;  %v1925_v45 = vsub.s32 5, %v1913_v37 }
   0x5   :  { %v1573_v7 = vpack.c.bf16 %v55_v4, %v31_v2  ;;  %v67_v11 = vld [vmem:[%s3099_s1 + $0x188] sm:$0xff]  ;;  %1382 = vmatprep.subr.bf16.mxu1 %v1381_v3  ;;  %v1575_v12 = vpack.c.bf16 %v54_v10, %v30_v9  ;;  %v66_v18 = vld [vmem:[%s3099_s1 + $0x180] sm:$0xff] }
   0x6   :  { %v91_v13 = vld [vmem:[%s3099_s1 + $0x248] sm:$0xff]  ;;  %1384 = vmatpush1.bf16.xpose.msra.mxu1 %v1383_v8  ;;  %v90_v19 = vld [vmem:[%s3099_s1 + $0x240] sm:$0xff] }
   0x7   :  { %v79_v14 = vld [vmem:[%s3099_s1 + $0x1e8] sm:$0xff]  ;;  %1574 = vmatprep.subr.bf16.mxu0 %v1573_v7  ;;  %v1385_v16 = vpack.c.bf16 %v91_v13, %v67_v11  ;;  %v78_v20 = vld [vmem:[%s3099_s1 + $0x1e0] sm:$0xff]  ;;  %v1387_v26 = vpack.c.bf16 %v90_v19, %v66_v18 }
   0x8   :  { %v103_v15 = vld [vmem:[%s3099_s1 + $0x2a8] sm:$0xff]  ;;  %1576 = vmatpush1.bf16.xpose.msra.mxu0 %v1575_v12  ;;  %v102_v21 = vld [vmem:[%s3099_s1 + $0x2a0] sm:$0xff] }
   0x9   :  { %v1577_v17 = vpack.c.bf16 %v103_v15, %v79_v14  ;;  %1386 = vmatprep.subr.bf16.mxu1 %v1385_v16  ;;  %v115_v22 = vld [vmem:[%s3099_s1 + $0x308] sm:$0xff]  ;;  %v1579_v27 = vpack.c.bf16 %v102_v21, %v78_v20  ;;  %v114_v31 = vld [vmem:[%s3099_s1 + $0x300] sm:$0xff] }
   0xa   :  { %v139_v23 = vld [vmem:[%s3099_s1 + $0x3c8] sm:$0xff]  ;;  %v138_v32 = vld [vmem:[%s3099_s1 + $0x3c0] sm:$0xff] }
   0xb   :  { %1578 = vmatprep.subr.bf16.mxu0 %v1577_v17  ;;  %v127_v24 = vld [vmem:[%s3099_s1 + $0x368] sm:$0xff]  ;;  %v1389_v28 = vpack.c.bf16 %v139_v23, %v115_v22  ;;  %v126_v33 = vld [vmem:[%s3099_s1 + $0x360] sm:$0xff]  ;;  %v1391_v40 = vpack.c.bf16 %v138_v32, %v114_v31 }
   0xc   :  { %v151_v25 = vld [vmem:[%s3099_s1 + $0x428] sm:$0xff]  ;;  %v150_v34 = vld [vmem:[%s3099_s1 + $0x420] sm:$0xff] }
   0xd   :  { %v1581_v29 = vpack.c.bf16 %v151_v25, %v127_v24  ;;  %v163_v35 = vld [vmem:[%s3099_s1 + $0x488] sm:$0xff]  ;;  %v1583_v41 = vpack.c.bf16 %v150_v34, %v126_v33  ;;  %v162_v46 = vld [vmem:[%s3099_s1 + $0x480] sm:$0xff] }
   0xe   :  { %1388 = vmatpush1.bf16.xpose.msra.mxu1 %v1387_v26  ;;  %v187_v36 = vld [vmem:[%s3099_s1 + $0x548] sm:$0xff]  ;;  %v186_v47 = vld [vmem:[%s3099_s1 + $0x540] sm:$0xff] }
   0xf   :  { %1390 = vmatprep.subr.bf16.mxu1 %v1389_v28  ;;  %v175_v38 = vld [vmem:[%s3099_s1 + $0x4e8] sm:$0xff]  ;;  %v1393_v42 = vpack.c.bf16 %v187_v36, %v163_v35  ;;  %v174_v48 = vld [vmem:[%s3099_s1 + $0x4e0] sm:$0xff]  ;;  %v1395_v58 = vpack.c.bf16 %v186_v47, %v162_v46 }
  0x10   :  { %1580 = vmatpush1.bf16.xpose.msra.mxu0 %v1579_v27  ;;  %v199_v39 = vld [vmem:[%s3099_s1 + $0x5a8] sm:$0xff]  ;;  %v198_v49 = vld [vmem:[%s3099_s1 + $0x5a0] sm:$0xff] }
  0x11   :  { %1582 = vmatprep.subr.bf16.mxu0 %v1581_v29  ;;  %v1585_v43 = vpack.c.bf16 %v199_v39, %v175_v38  ;;  %v1942_v50 = vld [vmem:[%s3098_s0] sm:$0xff]  ;;  %v211_v51 = vld [vmem:[%s3099_s1 + $0x608] sm:$0xff]  ;;  %v1587_v59 = vpack.c.bf16 %v198_v49, %v174_v48  ;;  %v21_v39 = vld [vmem:[%s3099_s1 + $0x18] sm:$0xff]  ;;  %v2062_v49 = vsub.s32 0, %v1913_v37 }
  0x12   :  { %v235_v52 = vld [vmem:[%s3099_s1 + $0x6c8] sm:$0xff]  ;;  %v413_v53 = vrot.slane %v1942_v50, %v1922_v44  ;;  %v210_v62 = vld [vmem:[%s3099_s1 + $0x600] sm:$0xff] }
  0x13   :  { %v1955_v54 = vld [vmem:[%s3098_s0 + $0x8] sm:$0xff]  ;;  %v1397_v60 = vpack.c.bf16 %v235_v52, %v211_v51  ;;  %v234_v63 = vld [vmem:[%s3099_s1 + $0x6c0] sm:$0xff]  ;;  %v2065_v51 = vsub.s32 4, %v1913_v37  ;;  %v20_v52 = vld [vmem:[%s3099_s1 + $0x10] sm:$0xff] }
  0x14   :  { %v223_v55 = vld [vmem:[%s3099_s1 + $0x668] sm:$0xff]  ;;  %v461_v57 = vrot.slane %v1955_v54, %v1925_v45  ;;  %590 = vmatprep.mubr.f32.mxu1 %v413_v53  ;;  %v222_v0 = vld [vmem:[%s3099_s1 + $0x660] sm:$0xff]  ;;  %v1399_v6 = vpack.c.bf16 %v234_v63, %v210_v62  ;;  %v44_v53 = vld [vmem:[%s3099_s1 + $0xd0] sm:$0xff]  ;;  %v2097_v63 = vsub.s32 7, %v1913_v37 }
  0x15   :  { %v247_v56 = vld [vmem:[%s3099_s1 + $0x728] sm:$0xff]  ;;  %v246_v1 = vld [vmem:[%s3099_s1 + $0x720] sm:$0xff]  ;;  %v105_v62 = vld [vmem:[%s3099_s1 + $0x2b8] sm:$0xff] }
  0x16   :  { %1392 = vmatpush1.bf16.xpose.msra.mxu1 %v1391_v40  ;;  %1010 = vmatprep.mubr.f32.mxu0 %v461_v57  ;;  %v1589_v61 = vpack.c.bf16 %v247_v56, %v223_v55  ;;  %v259_v2 = vld [vmem:[%s3099_s1 + $0x788] sm:$0xff]  ;;  %v1591_v7 = vpack.c.bf16 %v246_v1, %v222_v0  ;;  %v258_v10 = vld [vmem:[%s3099_s1 + $0x780] sm:$0xff]  ;;  %v45_v40 = vld [vmem:[%s3099_s1 + $0xd8] sm:$0xff]  ;;  %v1415_v0 = vpack.c.bf16 %v44_v53, %v20_v52 }
  0x17   :  { %1394 = vmatprep.subr.bf16.mxu1 %v1393_v42  ;;  %v283_v3 = vld [vmem:[%s3099_s1 + $0x848] sm:$0xff]  ;;  %v282_v11 = vld [vmem:[%s3099_s1 + $0x840] sm:$0xff]  ;;  %v57_v42 = vld [vmem:[%s3099_s1 + $0x138] sm:$0xff]  ;;  %v1413_v47 = vpack.c.bf16 %v45_v40, %v21_v39  ;;  %v457_v1 = vrot.slane %v1955_v54, %v2065_v51 }
  0x18   :  { %1584 = vmatpush1.bf16.xpose.msra.mxu0 %v1583_v41  ;;  %v271_v4 = vld [vmem:[%s3099_s1 + $0x7e8] sm:$0xff]  ;;  %v1401_v8 = vpack.c.bf16 %v283_v3, %v259_v2  ;;  %v270_v12 = vld [vmem:[%s3099_s1 + $0x7e0] sm:$0xff]  ;;  %v1403_v18 = vpack.c.bf16 %v282_v11, %v258_v10  ;;  %v33_v41 = vld [vmem:[%s3099_s1 + $0x78] sm:$0xff] }
  0x19   :  { %1586 = vmatprep.subr.bf16.mxu0 %v1585_v43  ;;  %v295_v5 = vld [vmem:[%s3099_s1 + $0x8a8] sm:$0xff]  ;;  %v294_v13 = vld [vmem:[%s3099_s1 + $0x8a0] sm:$0xff]  ;;  %v1605_v48 = vpack.c.bf16 %v57_v42, %v33_v41  ;;  %v32_v55 = vld [vmem:[%s3099_s1 + $0x70] sm:$0xff] }
  0x1a   :  { %v1593_v9 = vpack.c.bf16 %v295_v5, %v271_v4  ;;  %v307_v14 = vld [vmem:[%s3099_s1 + $0x908] sm:$0xff]  ;;  %v1595_v19 = vpack.c.bf16 %v294_v13, %v270_v12  ;;  %v306_v22 = vld [vmem:[%s3099_s1 + $0x900] sm:$0xff]  ;;  %v56_v56 = vld [vmem:[%s3099_s1 + $0x130] sm:$0xff] }
  0x1b   :  { %v331_v15 = vld [vmem:[%s3099_s1 + $0x9c8] sm:$0xff]  ;;  %v330_v23 = vld [vmem:[%s3099_s1 + $0x9c0] sm:$0xff]  ;;  %v69_v57 = vld [vmem:[%s3099_s1 + $0x198] sm:$0xff]  ;;  %v1607_v2 = vpack.c.bf16 %v56_v56, %v32_v55 }
  0x1c   :  { %v319_v16 = vld [vmem:[%s3099_s1 + $0x968] sm:$0xff]  ;;  %v1405_v20 = vpack.c.bf16 %v331_v15, %v307_v14  ;;  %v318_v24 = vld [vmem:[%s3099_s1 + $0x960] sm:$0xff]  ;;  %v1407_v30 = vpack.c.bf16 %v330_v23, %v306_v22 }
  0x1d   :  { %v343_v17 = vld [vmem:[%s3099_s1 + $0xa28] sm:$0xff]  ;;  %v342_v25 = vld [vmem:[%s3099_s1 + $0xa20] sm:$0xff] }
  0x1e   :  { %1396 = vmatpush1.bf16.xpose.msra.mxu1 %v1395_v58  ;;  %v1597_v21 = vpack.c.bf16 %v343_v17, %v319_v16  ;;  %v355_v26 = vld [vmem:[%s3099_s1 + $0xa88] sm:$0xff]  ;;  %v1599_v31 = vpack.c.bf16 %v342_v25, %v318_v24  ;;  %v354_v34 = vld [vmem:[%s3099_s1 + $0xa80] sm:$0xff]  ;;  %v93_v58 = vld [vmem:[%s3099_s1 + $0x258] sm:$0xff] }
  0x1f   :  { %1398 = vmatprep.subr.bf16.mxu1 %v1397_v60  ;;  %v379_v27 = vld [vmem:[%s3099_s1 + $0xb48] sm:$0xff]  ;;  %v378_v35 = vld [vmem:[%s3099_s1 + $0xb40] sm:$0xff]  ;;  %v409_v60 = vrot.slane %v1942_v50, %v2062_v49  ;;  %v1417_v3 = vpack.c.bf16 %v93_v58, %v69_v57 }
  0x20   :  { %1588 = vmatpush1.bf16.xpose.msra.mxu0 %v1587_v59  ;;  %v367_v28 = vld [vmem:[%s3099_s1 + $0xae8] sm:$0xff]  ;;  %v1409_v32 = vpack.c.bf16 %v379_v27, %v355_v26  ;;  %v366_v36 = vld [vmem:[%s3099_s1 + $0xae0] sm:$0xff]  ;;  %v1411_v43 = vpack.c.bf16 %v378_v35, %v354_v34  ;;  %v2086_v59 = vsub.s32 3, %v1913_v37 }
  0x21   :  { %1590 = vmatprep.subr.bf16.mxu0 %v1589_v61  ;;  %v391_v29 = vld [vmem:[%s3099_s1 + $0xba8] sm:$0xff]  ;;  %v390_v38 = vld [vmem:[%s3099_s1 + $0xba0] sm:$0xff]  ;;  %v81_v61 = vld [vmem:[%s3099_s1 + $0x1f8] sm:$0xff] }
  0x22   :  { %v1601_v33 = vpack.c.bf16 %v391_v29, %v367_v28  ;;  %v1603_v46 = vpack.c.bf16 %v390_v38, %v366_v36  ;;  %v1609_v4 = vpack.c.bf16 %v105_v62, %v81_v61  ;;  %v421_v5 = vrot.slane %v1942_v50, %v2086_v59 }
  0x26   :  { %1400 = vmatpush1.bf16.xpose.msra.mxu1 %v1399_v6  ;;  %v469_v6 = vrot.slane %v1955_v54, %v2097_v63 }
  0x27   :  { %1402 = vmatprep.subr.bf16.mxu1 %v1401_v8 }
  0x28   :  { %1592 = vmatpush1.bf16.xpose.msra.mxu0 %v1591_v7 }
  0x29   :  { %1594 = vmatprep.subr.bf16.mxu0 %v1593_v9 }
  0x2e   :  { %1404 = vmatpush1.bf16.xpose.msra.mxu1 %v1403_v18 }
  0x2f   :  { %1406 = vmatprep.subr.bf16.mxu1 %v1405_v20 }
  0x30   :  { %1596 = vmatpush1.bf16.xpose.msra.mxu0 %v1595_v19 }
  0x31   :  { %1598 = vmatprep.subr.bf16.mxu0 %v1597_v21 }
  0x36   :  { %1408 = vmatpush1.bf16.xpose.msra.mxu1 %v1407_v30 }
  0x37   :  { %1410 = vmatprep.subr.bf16.mxu1 %v1409_v32 }
  0x38   :  { %1600 = vmatpush1.bf16.xpose.msra.mxu0 %v1599_v31 }
  0x39   :  { %1602 = vmatprep.subr.bf16.mxu0 %v1601_v33 }
  0x3e   :  { %1412 = vmatpush1.bf16.xpose.msra.mxu1 %v1411_v43 }
  0x3f   :  { %1414 = vmatprep.subr.bf16.mxu1 %v1413_v47 }
  0x40   :  { %1604 = vmatpush1.bf16.xpose.msra.mxu0 %v1603_v46 }
  0x41   :  { %1606 = vmatprep.subr.bf16.mxu0 %v1605_v48 }
  0x45   :  { %591 = vmatmul.mubr.f32.vlgmr.msra.gmra.mrb[0].mxu1 %v409_v60 }
  0x46   :  { %8 = vsyncpa [#allocation3], 0  ;;  %1416 = vmatpush1.bf16.xpose.msra.mxu1 %v1415_v0  ;;  %v68_v7 = vld [vmem:[%s3099_s1 + $0x190] sm:$0xff]  ;;  %v117_v11 = vld [vmem:[%s3099_s1 + $0x318] sm:$0xff]  ;;  %660 = vmatprep.mubr.f32.mxu1 %v421_v5 }
  0x47   :  { %1011 = vmatmul.mubr.f32.vlgmr.msra.gmra.mrb[0].mxu0 %v457_v1  ;;  %1418 = vmatprep.subr.bf16.mxu1 %v1417_v3  ;;  %v92_v8 = vld [vmem:[%s3099_s1 + $0x250] sm:$0xff]  ;;  %v141_v12 = vld [vmem:[%s3099_s1 + $0x3d8] sm:$0xff] }
  0x48   :  { %1608 = vmatpush1.bf16.xpose.msra.mxu0 %v1607_v2  ;;  %v80_v9 = vld [vmem:[%s3099_s1 + $0x1f0] sm:$0xff]  ;;  %v129_v13 = vld [vmem:[%s3099_s1 + $0x378] sm:$0xff]  ;;  %1080 = vmatprep.mubr.f32.mxu0 %v469_v6  ;;  %v1419_v15 = vpack.c.bf16 %v92_v8, %v68_v7  ;;  %v1421_v17 = vpack.c.bf16 %v141_v12, %v117_v11 }
  0x49   :  { %1610 = vmatprep.subr.bf16.mxu0 %v1609_v4  ;;  %v104_v10 = vld [vmem:[%s3099_s1 + $0x2b0] sm:$0xff]  ;;  %v153_v14 = vld [vmem:[%s3099_s1 + $0x438] sm:$0xff] }
  0x4a   :  { %v1611_v16 = vpack.c.bf16 %v104_v10, %v80_v9  ;;  %v1613_v18 = vpack.c.bf16 %v153_v14, %v129_v13  ;;  %v116_v19 = vld [vmem:[%s3099_s1 + $0x310] sm:$0xff]  ;;  %v165_v23 = vld [vmem:[%s3099_s1 + $0x498] sm:$0xff] }
  0x4b   :  { %v140_v20 = vld [vmem:[%s3099_s1 + $0x3d0] sm:$0xff]  ;;  %v189_v24 = vld [vmem:[%s3099_s1 + $0x558] sm:$0xff] }
  0x4c   :  { %v128_v21 = vld [vmem:[%s3099_s1 + $0x370] sm:$0xff]  ;;  %v177_v25 = vld [vmem:[%s3099_s1 + $0x4f8] sm:$0xff]  ;;  %v1423_v27 = vpack.c.bf16 %v140_v20, %v116_v19  ;;  %v1425_v29 = vpack.c.bf16 %v189_v24, %v165_v23 }
  0x4d   :  { %v152_v22 = vld [vmem:[%s3099_s1 + $0x430] sm:$0xff]  ;;  %v201_v26 = vld [vmem:[%s3099_s1 + $0x5b8] sm:$0xff] }
  0x4e   :  { %1420 = vmatpush1.bf16.xpose.msra.mxu1 %v1419_v15  ;;  %v1615_v28 = vpack.c.bf16 %v152_v22, %v128_v21  ;;  %v1617_v30 = vpack.c.bf16 %v201_v26, %v177_v25  ;;  %v164_v31 = vld [vmem:[%s3099_s1 + $0x490] sm:$0xff]  ;;  %v213_v35 = vld [vmem:[%s3099_s1 + $0x618] sm:$0xff] }
  0x4f   :  { %1422 = vmatprep.subr.bf16.mxu1 %v1421_v17  ;;  %v188_v32 = vld [vmem:[%s3099_s1 + $0x550] sm:$0xff]  ;;  %v237_v36 = vld [vmem:[%s3099_s1 + $0x6d8] sm:$0xff] }
  0x50   :  { %1612 = vmatpush1.bf16.xpose.msra.mxu0 %v1611_v16  ;;  %v176_v33 = vld [vmem:[%s3099_s1 + $0x4f0] sm:$0xff]  ;;  %v225_v38 = vld [vmem:[%s3099_s1 + $0x678] sm:$0xff]  ;;  %v1427_v40 = vpack.c.bf16 %v188_v32, %v164_v31  ;;  %v1429_v42 = vpack.c.bf16 %v237_v36, %v213_v35  ;;  %v59_v31 = vld [vmem:[%s3099_s1 + $0x148] sm:$0xff]  ;;  %v2274_v36 = vsub.s32 2, %v1913_v37 }
  0x51   :  { %1614 = vmatprep.subr.bf16.mxu0 %v1613_v18  ;;  %v200_v34 = vld [vmem:[%s3099_s1 + $0x5b0] sm:$0xff]  ;;  %v249_v39 = vld [vmem:[%s3099_s1 + $0x738] sm:$0xff] }
  0x52   :  { %v1619_v41 = vpack.c.bf16 %v200_v34, %v176_v33  ;;  %v1621_v43 = vpack.c.bf16 %v249_v39, %v225_v38  ;;  %v212_v46 = vld [vmem:[%s3099_s1 + $0x610] sm:$0xff]  ;;  %v261_v53 = vld [vmem:[%s3099_s1 + $0x798] sm:$0xff]  ;;  %v2277_v38 = vsub.s32 6, %v1913_v37  ;;  %v22_v39 = vld [vmem:[%s3099_s1 + $0x20] sm:$0xff] }
  0x53   :  { %v236_v47 = vld [vmem:[%s3099_s1 + $0x6d0] sm:$0xff]  ;;  %v285_v55 = vld [vmem:[%s3099_s1 + $0x858] sm:$0xff]  ;;  %v58_v37 = vld [vmem:[%s3099_s1 + $0x140] sm:$0xff] }
  0x54   :  { %v224_v48 = vld [vmem:[%s3099_s1 + $0x670] sm:$0xff]  ;;  %v273_v56 = vld [vmem:[%s3099_s1 + $0x7f8] sm:$0xff]  ;;  %v1431_v58 = vpack.c.bf16 %v236_v47, %v212_v46  ;;  %v1433_v61 = vpack.c.bf16 %v285_v55, %v261_v53  ;;  %v417_v46 = vrot.slane %v1942_v50, %v2274_v36  ;;  %v83_v47 = vld [vmem:[%s3099_s1 + $0x208] sm:$0xff]  ;;  %v465_v53 = vrot.slane %v1955_v54, %v2277_v38 }
  0x55   :  { %v248_v52 = vld [vmem:[%s3099_s1 + $0x730] sm:$0xff]  ;;  %v297_v57 = vld [vmem:[%s3099_s1 + $0x8b8] sm:$0xff] }
  0x56   :  { %1424 = vmatpush1.bf16.xpose.msra.mxu1 %v1423_v27  ;;  %v1623_v60 = vpack.c.bf16 %v248_v52, %v224_v48  ;;  %v1625_v62 = vpack.c.bf16 %v297_v57, %v273_v56  ;;  %v260_v0 = vld [vmem:[%s3099_s1 + $0x790] sm:$0xff]  ;;  %v309_v4 = vld [vmem:[%s3099_s1 + $0x918] sm:$0xff]  ;;  %v107_v48 = vld [vmem:[%s3099_s1 + $0x2c8] sm:$0xff] }
  0x57   :  { %1426 = vmatprep.subr.bf16.mxu1 %v1425_v29  ;;  %v284_v1 = vld [vmem:[%s3099_s1 + $0x850] sm:$0xff]  ;;  %v333_v5 = vld [vmem:[%s3099_s1 + $0x9d8] sm:$0xff]  ;;  %v47_v29 = vld [vmem:[%s3099_s1 + $0xe8] sm:$0xff] }
  0x58   :  { %1616 = vmatpush1.bf16.xpose.msra.mxu0 %v1615_v28  ;;  %v272_v2 = vld [vmem:[%s3099_s1 + $0x7f0] sm:$0xff]  ;;  %v321_v6 = vld [vmem:[%s3099_s1 + $0x978] sm:$0xff]  ;;  %v1435_v8 = vpack.c.bf16 %v284_v1, %v260_v0  ;;  %v1437_v10 = vpack.c.bf16 %v333_v5, %v309_v4  ;;  %v23_v28 = vld [vmem:[%s3099_s1 + $0x28] sm:$0xff] }
  0x59   :  { %1618 = vmatprep.subr.bf16.mxu0 %v1617_v30  ;;  %v296_v3 = vld [vmem:[%s3099_s1 + $0x8b0] sm:$0xff]  ;;  %v345_v7 = vld [vmem:[%s3099_s1 + $0xa38] sm:$0xff]  ;;  %v35_v30 = vld [vmem:[%s3099_s1 + $0x88] sm:$0xff]  ;;  %v1445_v34 = vpack.c.bf16 %v47_v29, %v23_v28 }
  0x5a   :  { %v1627_v9 = vpack.c.bf16 %v296_v3, %v272_v2  ;;  %v1629_v11 = vpack.c.bf16 %v345_v7, %v321_v6  ;;  %v308_v12 = vld [vmem:[%s3099_s1 + $0x910] sm:$0xff]  ;;  %v357_v16 = vld [vmem:[%s3099_s1 + $0xa98] sm:$0xff]  ;;  %v1637_v35 = vpack.c.bf16 %v59_v31, %v35_v30  ;;  %v94_v0 = vld [vmem:[%s3099_s1 + $0x260] sm:$0xff] }
  0x5b   :  { %v332_v13 = vld [vmem:[%s3099_s1 + $0x9d0] sm:$0xff]  ;;  %v381_v17 = vld [vmem:[%s3099_s1 + $0xb58] sm:$0xff]  ;;  %v82_v1 = vld [vmem:[%s3099_s1 + $0x200] sm:$0xff] }
  0x5c   :  { %v320_v14 = vld [vmem:[%s3099_s1 + $0x970] sm:$0xff]  ;;  %v369_v18 = vld [vmem:[%s3099_s1 + $0xaf8] sm:$0xff]  ;;  %v1439_v20 = vpack.c.bf16 %v332_v13, %v308_v12  ;;  %v1441_v22 = vpack.c.bf16 %v381_v17, %v357_v16  ;;  %v106_v2 = vld [vmem:[%s3099_s1 + $0x2c0] sm:$0xff] }
  0x5d   :  { %v344_v15 = vld [vmem:[%s3099_s1 + $0xa30] sm:$0xff]  ;;  %v393_v19 = vld [vmem:[%s3099_s1 + $0xbb8] sm:$0xff]  ;;  %v119_v3 = vld [vmem:[%s3099_s1 + $0x328] sm:$0xff] }
  0x5e   :  { %1428 = vmatpush1.bf16.xpose.msra.mxu1 %v1427_v40  ;;  %v1631_v21 = vpack.c.bf16 %v344_v15, %v320_v14  ;;  %v1633_v23 = vpack.c.bf16 %v393_v19, %v369_v18  ;;  %v356_v24 = vld [vmem:[%s3099_s1 + $0xa90] sm:$0xff]  ;;  %v46_v40 = vld [vmem:[%s3099_s1 + $0xe0] sm:$0xff]  ;;  %v143_v4 = vld [vmem:[%s3099_s1 + $0x3e8] sm:$0xff] }
  0x5f   :  { %1430 = vmatprep.subr.bf16.mxu1 %v1429_v42  ;;  %v380_v25 = vld [vmem:[%s3099_s1 + $0xb50] sm:$0xff]  ;;  %v71_v42 = vld [vmem:[%s3099_s1 + $0x1a8] sm:$0xff]  ;;  %v1447_v52 = vpack.c.bf16 %v46_v40, %v22_v39  ;;  %v142_v12 = vld [vmem:[%s3099_s1 + $0x3e0] sm:$0xff] }
  0x60   :  { %1620 = vmatpush1.bf16.xpose.msra.mxu0 %v1619_v41  ;;  %v368_v26 = vld [vmem:[%s3099_s1 + $0xaf0] sm:$0xff]  ;;  %v1443_v32 = vpack.c.bf16 %v380_v25, %v356_v24  ;;  %v34_v41 = vld [vmem:[%s3099_s1 + $0x80] sm:$0xff]  ;;  %v131_v5 = vld [vmem:[%s3099_s1 + $0x388] sm:$0xff] }
  0x61   :  { %1622 = vmatprep.subr.bf16.mxu0 %v1621_v43  ;;  %v392_v27 = vld [vmem:[%s3099_s1 + $0xbb0] sm:$0xff]  ;;  %v95_v43 = vld [vmem:[%s3099_s1 + $0x268] sm:$0xff]  ;;  %v1639_v56 = vpack.c.bf16 %v58_v37, %v34_v41  ;;  %v130_v13 = vld [vmem:[%s3099_s1 + $0x380] sm:$0xff] }
  0x62   :  { %v1635_v33 = vpack.c.bf16 %v392_v27, %v368_v26  ;;  %v2310_v55 = vld [vmem:[%s3098_s0 + $0x10] sm:$0xff]  ;;  %v1449_v57 = vpack.c.bf16 %v95_v43, %v71_v42  ;;  %v155_v6 = vld [vmem:[%s3099_s1 + $0x448] sm:$0xff]  ;;  %v154_v14 = vld [vmem:[%s3099_s1 + $0x440] sm:$0xff] }
  0x63   :  { %v167_v15 = vld [vmem:[%s3099_s1 + $0x4a8] sm:$0xff]  ;;  %v190_v24 = vld [vmem:[%s3099_s1 + $0x560] sm:$0xff] }
  0x64   :  { %v191_v16 = vld [vmem:[%s3099_s1 + $0x568] sm:$0xff]  ;;  %v178_v25 = vld [vmem:[%s3099_s1 + $0x500] sm:$0xff] }
  0x65   :  { %v179_v17 = vld [vmem:[%s3099_s1 + $0x508] sm:$0xff]  ;;  %v202_v26 = vld [vmem:[%s3099_s1 + $0x5c0] sm:$0xff] }
  0x66   :  { %1432 = vmatpush1.bf16.xpose.msra.mxu1 %v1431_v58  ;;  %v1641_v58 = vpack.c.bf16 %v107_v48, %v83_v47  ;;  %v203_v18 = vld [vmem:[%s3099_s1 + $0x5c8] sm:$0xff]  ;;  %v238_v39 = vld [vmem:[%s3099_s1 + $0x6e0] sm:$0xff] }
  0x67   :  { %1434 = vmatprep.subr.bf16.mxu1 %v1433_v61  ;;  %v477_v61 = vrot.slane %v2310_v55, %v1922_v44  ;;  %v215_v27 = vld [vmem:[%s3099_s1 + $0x628] sm:$0xff]  ;;  %v226_v40 = vld [vmem:[%s3099_s1 + $0x680] sm:$0xff] }
  0x68   :  { %1624 = vmatpush1.bf16.xpose.msra.mxu0 %v1623_v60  ;;  %v429_v60 = vrot.slane %v1942_v50, %v1925_v45  ;;  %v239_v28 = vld [vmem:[%s3099_s1 + $0x6e8] sm:$0xff]  ;;  %v250_v41 = vld [vmem:[%s3099_s1 + $0x740] sm:$0xff] }
  0x69   :  { %1626 = vmatprep.subr.bf16.mxu0 %v1625_v62  ;;  %v70_v62 = vld [vmem:[%s3099_s1 + $0x1a0] sm:$0xff]  ;;  %v227_v29 = vld [vmem:[%s3099_s1 + $0x688] sm:$0xff]  ;;  %v1655_v48 = vpack.c.bf16 %v250_v41, %v226_v40  ;;  %v85_v40 = vld [vmem:[%s3099_s1 + $0x218] sm:$0xff] }
  0x6a   :  { %v1451_v7 = vpack.c.bf16 %v94_v0, %v70_v62  ;;  %v251_v30 = vld [vmem:[%s3099_s1 + $0x748] sm:$0xff]  ;;  %v109_v41 = vld [vmem:[%s3099_s1 + $0x2d8] sm:$0xff] }
  0x6b   :  { %v263_v37 = vld [vmem:[%s3099_s1 + $0x7a8] sm:$0xff] }
  0x6c   :  { %v287_v42 = vld [vmem:[%s3099_s1 + $0x868] sm:$0xff] }
  0x6d   :  { %v275_v43 = vld [vmem:[%s3099_s1 + $0x808] sm:$0xff] }
  0x6e   :  { %1436 = vmatpush1.bf16.xpose.msra.mxu1 %v1435_v8  ;;  %v1643_v8 = vpack.c.bf16 %v106_v2, %v82_v1  ;;  %v335_v62 = vld [vmem:[%s3099_s1 + $0x9e8] sm:$0xff] }
  0x6f   :  { %1438 = vmatprep.subr.bf16.mxu1 %v1437_v10  ;;  %v1645_v10 = vpack.c.bf16 %v155_v6, %v131_v5  ;;  %v323_v0 = vld [vmem:[%s3099_s1 + $0x988] sm:$0xff]  ;;  %v310_v6 = vld [vmem:[%s3099_s1 + $0x920] sm:$0xff] }
  0x70   :  { %1628 = vmatpush1.bf16.xpose.msra.mxu0 %v1627_v9  ;;  %v1453_v9 = vpack.c.bf16 %v143_v4, %v119_v3  ;;  %v347_v1 = vld [vmem:[%s3099_s1 + $0xa48] sm:$0xff] }
  0x71   :  { %1630 = vmatprep.subr.bf16.mxu0 %v1629_v11  ;;  %v118_v11 = vld [vmem:[%s3099_s1 + $0x320] sm:$0xff]  ;;  %v1661_v5 = vpack.c.bf16 %v347_v1, %v323_v0  ;;  %v157_v0 = vld [vmem:[%s3099_s1 + $0x458] sm:$0xff] }
  0x72   :  { %v1455_v19 = vpack.c.bf16 %v142_v12, %v118_v11  ;;  %v383_v11 = vld [vmem:[%s3099_s1 + $0xb68] sm:$0xff] }
  0x73   :  { %v371_v12 = vld [vmem:[%s3099_s1 + $0xb08] sm:$0xff] }
  0x76   :  { %1440 = vmatpush1.bf16.xpose.msra.mxu1 %v1439_v20  ;;  %v1647_v20 = vpack.c.bf16 %v154_v14, %v130_v13  ;;  %v395_v13 = vld [vmem:[%s3099_s1 + $0xbc8] sm:$0xff] }
  0x77   :  { %1442 = vmatprep.subr.bf16.mxu1 %v1441_v22  ;;  %v1649_v22 = vpack.c.bf16 %v203_v18, %v179_v17  ;;  %v1665_v17 = vpack.c.bf16 %v395_v13, %v371_v12  ;;  %v358_v18 = vld [vmem:[%s3099_s1 + $0xaa0] sm:$0xff]  ;;  %v205_v12 = vld [vmem:[%s3099_s1 + $0x5d8] sm:$0xff] }
  0x78   :  { %1632 = vmatpush1.bf16.xpose.msra.mxu0 %v1631_v21  ;;  %v1457_v21 = vpack.c.bf16 %v191_v16, %v167_v15 }
  0x79   :  { %1634 = vmatprep.subr.bf16.mxu0 %v1633_v23  ;;  %v166_v23 = vld [vmem:[%s3099_s1 + $0x4a0] sm:$0xff] }
  0x7a   :  { %v1459_v31 = vpack.c.bf16 %v190_v24, %v166_v23  ;;  %v49_v23 = vld [vmem:[%s3099_s1 + $0xf8] sm:$0xff] }
  0x7b   :  { %v37_v24 = vld [vmem:[%s3099_s1 + $0x98] sm:$0xff] }
  0x7e   :  { %1444 = vmatpush1.bf16.xpose.msra.mxu1 %v1443_v32  ;;  %v1651_v32 = vpack.c.bf16 %v202_v26, %v178_v25  ;;  %v61_v25 = vld [vmem:[%s3099_s1 + $0x158] sm:$0xff] }
  0x7f   :  { %1446 = vmatprep.subr.bf16.mxu1 %v1445_v34  ;;  %v1653_v34 = vpack.c.bf16 %v251_v30, %v227_v29  ;;  %v1669_v29 = vpack.c.bf16 %v61_v25, %v37_v24  ;;  %v24_v30 = vld [vmem:[%s3099_s1 + $0x30] sm:$0xff]  ;;  %v253_v24 = vld [vmem:[%s3099_s1 + $0x758] sm:$0xff] }
  0x80   :  { %1636 = vmatpush1.bf16.xpose.msra.mxu0 %v1635_v33  ;;  %v1461_v33 = vpack.c.bf16 %v239_v28, %v215_v27 }
  0x81   :  { %1638 = vmatprep.subr.bf16.mxu0 %v1637_v35  ;;  %v214_v35 = vld [vmem:[%s3099_s1 + $0x620] sm:$0xff] }
  0x82   :  { %v1463_v47 = vpack.c.bf16 %v238_v39, %v214_v35  ;;  %v97_v35 = vld [vmem:[%s3099_s1 + $0x278] sm:$0xff]  ;;  %v425_v39 = vrot.slane %v1942_v50, %v2065_v51 }
  0x85   :  { %661 = vmatmul.mubr.f32.vlgmr.msra.gmra.mrb[0].mxu1 %v417_v46  ;;  %v299_v46 = vld [vmem:[%s3099_s1 + $0x8c8] sm:$0xff] }
  0x86   :  { %1448 = vmatpush1.bf16.xpose.msra.mxu1 %v1447_v52  ;;  %730 = vmatprep.mubr.f32.mxu1 %v429_v60  ;;  %v1465_v52 = vpack.c.bf16 %v287_v42, %v263_v37  ;;  %v298_v60 = vld [vmem:[%s3099_s1 + $0x8c0] sm:$0xff]  ;;  %v473_v42 = vrot.slane %v2310_v55, %v2062_v49 }
  0x87   :  { %1081 = vmatmul.mubr.f32.vlgmr.msra.gmra.mrb[0].mxu0 %v465_v53  ;;  %1450 = vmatprep.subr.bf16.mxu1 %v1449_v57  ;;  %v1657_v53 = vpack.c.bf16 %v299_v46, %v275_v43  ;;  %v286_v57 = vld [vmem:[%s3099_s1 + $0x860] sm:$0xff] }
  0x88   :  { %1640 = vmatpush1.bf16.xpose.msra.mxu0 %v1639_v56  ;;  %1150 = vmatprep.mubr.f32.mxu0 %v477_v61  ;;  %v262_v56 = vld [vmem:[%s3099_s1 + $0x7a0] sm:$0xff]  ;;  %v311_v61 = vld [vmem:[%s3099_s1 + $0x928] sm:$0xff] }
  0x89   :  { %1642 = vmatprep.subr.bf16.mxu0 %v1641_v58  ;;  %v274_v58 = vld [vmem:[%s3099_s1 + $0x800] sm:$0xff]  ;;  %v1467_v2 = vpack.c.bf16 %v286_v57, %v262_v56  ;;  %v1469_v4 = vpack.c.bf16 %v335_v62, %v311_v61  ;;  %v96_v56 = vld [vmem:[%s3099_s1 + $0x270] sm:$0xff]  ;;  %v145_v61 = vld [vmem:[%s3099_s1 + $0x3f8] sm:$0xff] }
  0x8a   :  { %v1659_v3 = vpack.c.bf16 %v298_v60, %v274_v58  ;;  %v84_v57 = vld [vmem:[%s3099_s1 + $0x210] sm:$0xff]  ;;  %v121_v60 = vld [vmem:[%s3099_s1 + $0x338] sm:$0xff] }
  0x8b   :  { %v108_v58 = vld [vmem:[%s3099_s1 + $0x2d0] sm:$0xff]  ;;  %v133_v62 = vld [vmem:[%s3099_s1 + $0x398] sm:$0xff] }
  0x8e   :  { %1452 = vmatpush1.bf16.xpose.msra.mxu1 %v1451_v7  ;;  %v334_v7 = vld [vmem:[%s3099_s1 + $0x9e0] sm:$0xff] }
  0x8f   :  { %1454 = vmatprep.subr.bf16.mxu1 %v1453_v9  ;;  %v346_v9 = vld [vmem:[%s3099_s1 + $0xa40] sm:$0xff]  ;;  %v1471_v14 = vpack.c.bf16 %v334_v7, %v310_v6  ;;  %v144_v6 = vld [vmem:[%s3099_s1 + $0x3f0] sm:$0xff] }
  0x90   :  { %1644 = vmatpush1.bf16.xpose.msra.mxu0 %v1643_v8  ;;  %v322_v8 = vld [vmem:[%s3099_s1 + $0x980] sm:$0xff]  ;;  %v132_v7 = vld [vmem:[%s3099_s1 + $0x390] sm:$0xff] }
  0x91   :  { %1646 = vmatprep.subr.bf16.mxu0 %v1645_v10  ;;  %v359_v10 = vld [vmem:[%s3099_s1 + $0xaa8] sm:$0xff]  ;;  %v1663_v15 = vpack.c.bf16 %v346_v9, %v322_v8  ;;  %v156_v8 = vld [vmem:[%s3099_s1 + $0x450] sm:$0xff]  ;;  %v169_v9 = vld [vmem:[%s3099_s1 + $0x4b8] sm:$0xff] }
  0x92   :  { %v1473_v16 = vpack.c.bf16 %v383_v11, %v359_v10  ;;  %v193_v10 = vld [vmem:[%s3099_s1 + $0x578] sm:$0xff] }
  0x93   :  { %v181_v11 = vld [vmem:[%s3099_s1 + $0x518] sm:$0xff] }
  0x96   :  { %1456 = vmatpush1.bf16.xpose.msra.mxu1 %v1455_v19  ;;  %v382_v19 = vld [vmem:[%s3099_s1 + $0xb60] sm:$0xff] }
  0x97   :  { %1458 = vmatprep.subr.bf16.mxu1 %v1457_v21  ;;  %v394_v21 = vld [vmem:[%s3099_s1 + $0xbc0] sm:$0xff]  ;;  %v1475_v26 = vpack.c.bf16 %v382_v19, %v358_v18  ;;  %v192_v18 = vld [vmem:[%s3099_s1 + $0x570] sm:$0xff] }
  0x98   :  { %1648 = vmatpush1.bf16.xpose.msra.mxu0 %v1647_v20  ;;  %v370_v20 = vld [vmem:[%s3099_s1 + $0xb00] sm:$0xff]  ;;  %v180_v19 = vld [vmem:[%s3099_s1 + $0x510] sm:$0xff] }
  0x99   :  { %1650 = vmatprep.subr.bf16.mxu0 %v1649_v22  ;;  %v25_v22 = vld [vmem:[%s3099_s1 + $0x38] sm:$0xff]  ;;  %v1667_v27 = vpack.c.bf16 %v394_v21, %v370_v20  ;;  %v204_v20 = vld [vmem:[%s3099_s1 + $0x5d0] sm:$0xff] }
  0x9a   :  { %v1477_v28 = vpack.c.bf16 %v49_v23, %v25_v22  ;;  %v217_v21 = vld [vmem:[%s3099_s1 + $0x638] sm:$0xff] }
  0x9b   :  { %v241_v22 = vld [vmem:[%s3099_s1 + $0x6f8] sm:$0xff] }
  0x9c   :  { %v229_v23 = vld [vmem:[%s3099_s1 + $0x698] sm:$0xff] }
  0x9e   :  { %1460 = vmatpush1.bf16.xpose.msra.mxu1 %v1459_v31  ;;  %v48_v31 = vld [vmem:[%s3099_s1 + $0xf0] sm:$0xff] }
  0x9f   :  { %1462 = vmatprep.subr.bf16.mxu1 %v1461_v33  ;;  %v60_v33 = vld [vmem:[%s3099_s1 + $0x150] sm:$0xff]  ;;  %v1479_v37 = vpack.c.bf16 %v48_v31, %v24_v30 }
  0xa0   :  { %1652 = vmatpush1.bf16.xpose.msra.mxu0 %v1651_v32  ;;  %v36_v32 = vld [vmem:[%s3099_s1 + $0x90] sm:$0xff] }
  0xa1   :  { %1654 = vmatprep.subr.bf16.mxu0 %v1653_v34  ;;  %v73_v34 = vld [vmem:[%s3099_s1 + $0x1b8] sm:$0xff]  ;;  %v1671_v43 = vpack.c.bf16 %v60_v33, %v36_v32  ;;  %v240_v30 = vld [vmem:[%s3099_s1 + $0x6f0] sm:$0xff] }
  0xa2   :  { %v1481_v46 = vpack.c.bf16 %v97_v35, %v73_v34  ;;  %v228_v31 = vld [vmem:[%s3099_s1 + $0x690] sm:$0xff]  ;;  %v265_v33 = vld [vmem:[%s3099_s1 + $0x7b8] sm:$0xff] }
  0xa3   :  { %v252_v32 = vld [vmem:[%s3099_s1 + $0x750] sm:$0xff]  ;;  %v289_v34 = vld [vmem:[%s3099_s1 + $0x878] sm:$0xff] }
  0xa4   :  { %v277_v35 = vld [vmem:[%s3099_s1 + $0x818] sm:$0xff] }
  0xa6   :  { %1464 = vmatpush1.bf16.xpose.msra.mxu1 %v1463_v47  ;;  %v1673_v47 = vpack.c.bf16 %v109_v41, %v85_v40  ;;  %v1687_v41 = vpack.c.bf16 %v252_v32, %v228_v31  ;;  %v87_v31 = vld [vmem:[%s3099_s1 + $0x228] sm:$0xff] }
  0xa7   :  { %1466 = vmatprep.subr.bf16.mxu1 %v1465_v52  ;;  %v485_v52 = vrot.slane %v2310_v55, %v2086_v59  ;;  %v111_v32 = vld [vmem:[%s3099_s1 + $0x2e8] sm:$0xff] }
  0xa8   :  { %1656 = vmatpush1.bf16.xpose.msra.mxu0 %v1655_v48  ;;  %v437_v48 = vrot.slane %v1942_v50, %v2097_v63 }
  0xa9   :  { %1658 = vmatprep.subr.bf16.mxu0 %v1657_v53  ;;  %v72_v53 = vld [vmem:[%s3099_s1 + $0x1b0] sm:$0xff] }
  0xaa   :  { %v1483_v1 = vpack.c.bf16 %v96_v56, %v72_v53  ;;  %v337_v53 = vld [vmem:[%s3099_s1 + $0x9f8] sm:$0xff] }
  0xab   :  { %v325_v56 = vld [vmem:[%s3099_s1 + $0x998] sm:$0xff] }
  0xae   :  { %1468 = vmatpush1.bf16.xpose.msra.mxu1 %v1467_v2  ;;  %v1675_v2 = vpack.c.bf16 %v108_v58, %v84_v57  ;;  %v349_v57 = vld [vmem:[%s3099_s1 + $0xa58] sm:$0xff] }
  0xaf   :  { %1470 = vmatprep.subr.bf16.mxu1 %v1469_v4  ;;  %v1677_v4 = vpack.c.bf16 %v157_v0, %v133_v62  ;;  %v1693_v62 = vpack.c.bf16 %v349_v57, %v325_v56  ;;  %v312_v0 = vld [vmem:[%s3099_s1 + $0x930] sm:$0xff]  ;;  %v122_v57 = vld [vmem:[%s3099_s1 + $0x340] sm:$0xff] }
  0xb0   :  { %1660 = vmatpush1.bf16.xpose.msra.mxu0 %v1659_v3  ;;  %v1485_v3 = vpack.c.bf16 %v145_v61, %v121_v60 }
  0xb1   :  { %1662 = vmatprep.subr.bf16.mxu0 %v1661_v5  ;;  %v120_v5 = vld [vmem:[%s3099_s1 + $0x330] sm:$0xff] }
  0xb2   :  { %v1487_v13 = vpack.c.bf16 %v144_v6, %v120_v5  ;;  %v385_v5 = vld [vmem:[%s3099_s1 + $0xb78] sm:$0xff] }
  0xb3   :  { %v373_v6 = vld [vmem:[%s3099_s1 + $0xb18] sm:$0xff] }
  0xb6   :  { %1472 = vmatpush1.bf16.xpose.msra.mxu1 %v1471_v14  ;;  %v1679_v14 = vpack.c.bf16 %v156_v8, %v132_v7  ;;  %v397_v7 = vld [vmem:[%s3099_s1 + $0xbd8] sm:$0xff] }
  0xb7   :  { %1474 = vmatprep.subr.bf16.mxu1 %v1473_v16  ;;  %v1681_v16 = vpack.c.bf16 %v205_v12, %v181_v11  ;;  %v1697_v11 = vpack.c.bf16 %v397_v7, %v373_v6  ;;  %v360_v12 = vld [vmem:[%s3099_s1 + $0xab0] sm:$0xff]  ;;  %v170_v7 = vld [vmem:[%s3099_s1 + $0x4c0] sm:$0xff] }
  0xb8   :  { %1664 = vmatpush1.bf16.xpose.msra.mxu0 %v1663_v15  ;;  %v1489_v15 = vpack.c.bf16 %v193_v10, %v169_v9 }
  0xb9   :  { %1666 = vmatprep.subr.bf16.mxu0 %v1665_v17  ;;  %v168_v17 = vld [vmem:[%s3099_s1 + $0x4b0] sm:$0xff] }
  0xba   :  { %v1491_v25 = vpack.c.bf16 %v192_v18, %v168_v17  ;;  %v51_v17 = vld [vmem:[%s3099_s1 + $0x108] sm:$0xff] }
  0xbb   :  { %v39_v18 = vld [vmem:[%s3099_s1 + $0xa8] sm:$0xff] }
  0xbe   :  { %1476 = vmatpush1.bf16.xpose.msra.mxu1 %v1475_v26  ;;  %v1683_v26 = vpack.c.bf16 %v204_v20, %v180_v19  ;;  %v63_v19 = vld [vmem:[%s3099_s1 + $0x168] sm:$0xff] }
  0xbf   :  { %1478 = vmatprep.subr.bf16.mxu1 %v1477_v28  ;;  %v1685_v28 = vpack.c.bf16 %v253_v24, %v229_v23  ;;  %v1701_v23 = vpack.c.bf16 %v63_v19, %v39_v18  ;;  %v26_v24 = vld [vmem:[%s3099_s1 + $0x40] sm:$0xff] }
  0xc0   :  { %1668 = vmatpush1.bf16.xpose.msra.mxu0 %v1667_v27  ;;  %v1493_v27 = vpack.c.bf16 %v241_v22, %v217_v21  ;;  %v218_v19 = vld [vmem:[%s3099_s1 + $0x640] sm:$0xff] }
  0xc1   :  { %1670 = vmatprep.subr.bf16.mxu0 %v1669_v29  ;;  %v216_v29 = vld [vmem:[%s3099_s1 + $0x630] sm:$0xff] }
  0xc2   :  { %v1495_v40 = vpack.c.bf16 %v240_v30, %v216_v29  ;;  %v99_v29 = vld [vmem:[%s3099_s1 + $0x288] sm:$0xff]  ;;  %v433_v30 = vrot.slane %v1942_v50, %v2277_v38  ;;  %v493_v50 = vrot.slane %v2310_v55, %v1925_v45  ;;  %v110_v45 = vld [vmem:[%s3099_s1 + $0x2e0] sm:$0xff] }
  0xc5   :  { %731 = vmatmul.mubr.f32.vlgmr.msra.gmra.mrb[0].mxu1 %v425_v39  ;;  %v301_v39 = vld [vmem:[%s3099_s1 + $0x8d8] sm:$0xff] }
  0xc6   :  { %1480 = vmatpush1.bf16.xpose.msra.mxu1 %v1479_v37  ;;  %800 = vmatprep.mubr.f32.mxu1 %v437_v48  ;;  %v1497_v37 = vpack.c.bf16 %v289_v34, %v265_v33  ;;  %v300_v48 = vld [vmem:[%s3099_s1 + $0x8d0] sm:$0xff]  ;;  %v481_v34 = vrot.slane %v2310_v55, %v2274_v36 }
  0xc7   :  { %1151 = vmatmul.mubr.f32.vlgmr.msra.gmra.mrb[0].mxu0 %v473_v42  ;;  %1482 = vmatprep.subr.bf16.mxu1 %v1481_v46  ;;  %v1689_v42 = vpack.c.bf16 %v301_v39, %v277_v35  ;;  %v288_v46 = vld [vmem:[%s3099_s1 + $0x870] sm:$0xff] }
  0xc8   :  { %1672 = vmatpush1.bf16.xpose.msra.mxu0 %v1671_v43  ;;  %1220 = vmatprep.mubr.f32.mxu0 %v485_v52  ;;  %v264_v43 = vld [vmem:[%s3099_s1 + $0x7b0] sm:$0xff]  ;;  %v313_v52 = vld [vmem:[%s3099_s1 + $0x938] sm:$0xff] }
  0xc9   :  { %1674 = vmatprep.subr.bf16.mxu0 %v1673_v47  ;;  %v276_v47 = vld [vmem:[%s3099_s1 + $0x810] sm:$0xff]  ;;  %v1499_v58 = vpack.c.bf16 %v288_v46, %v264_v43  ;;  %v1501_v61 = vpack.c.bf16 %v337_v53, %v313_v52  ;;  %v147_v43 = vld [vmem:[%s3099_s1 + $0x408] sm:$0xff] }
  0xca   :  { %v1691_v60 = vpack.c.bf16 %v300_v48, %v276_v47  ;;  %v135_v46 = vld [vmem:[%s3099_s1 + $0x3a8] sm:$0xff] }
  0xcb   :  { %v159_v47 = vld [vmem:[%s3099_s1 + $0x468] sm:$0xff] }
  0xcc   :  { %v1709_v56 = vpack.c.bf16 %v159_v47, %v135_v46  ;;  %v350_v46 = vld [vmem:[%s3099_s1 + $0xa60] sm:$0xff]  ;;  %v363_v47 = vld [vmem:[%s3099_s1 + $0xac8] sm:$0xff] }
  0xce   :  { %1484 = vmatpush1.bf16.xpose.msra.mxu1 %v1483_v1  ;;  %v336_v1 = vld [vmem:[%s3099_s1 + $0x9f0] sm:$0xff] }
  0xcf   :  { %1486 = vmatprep.subr.bf16.mxu1 %v1485_v3  ;;  %v348_v3 = vld [vmem:[%s3099_s1 + $0xa50] sm:$0xff]  ;;  %v1503_v8 = vpack.c.bf16 %v336_v1, %v312_v0  ;;  %v195_v0 = vld [vmem:[%s3099_s1 + $0x588] sm:$0xff] }
  0xd0   :  { %1676 = vmatpush1.bf16.xpose.msra.mxu0 %v1675_v2  ;;  %v324_v2 = vld [vmem:[%s3099_s1 + $0x990] sm:$0xff]  ;;  %v183_v1 = vld [vmem:[%s3099_s1 + $0x528] sm:$0xff] }
  0xd1   :  { %1678 = vmatprep.subr.bf16.mxu0 %v1677_v4  ;;  %v361_v4 = vld [vmem:[%s3099_s1 + $0xab8] sm:$0xff]  ;;  %v1695_v9 = vpack.c.bf16 %v348_v3, %v324_v2  ;;  %v207_v2 = vld [vmem:[%s3099_s1 + $0x5e8] sm:$0xff] }
  0xd2   :  { %v1505_v10 = vpack.c.bf16 %v385_v5, %v361_v4  ;;  %v1713_v6 = vpack.c.bf16 %v207_v2, %v183_v1  ;;  %v398_v1 = vld [vmem:[%s3099_s1 + $0xbe0] sm:$0xff]  ;;  %v29_v2 = vld [vmem:[%s3099_s1 + $0x58] sm:$0xff] }
  0xd6   :  { %1488 = vmatpush1.bf16.xpose.msra.mxu1 %v1487_v13  ;;  %v384_v13 = vld [vmem:[%s3099_s1 + $0xb70] sm:$0xff] }
  0xd7   :  { %1490 = vmatprep.subr.bf16.mxu1 %v1489_v15  ;;  %v396_v15 = vld [vmem:[%s3099_s1 + $0xbd0] sm:$0xff]  ;;  %v1507_v20 = vpack.c.bf16 %v384_v13, %v360_v12  ;;  %v243_v12 = vld [vmem:[%s3099_s1 + $0x708] sm:$0xff] }
  0xd8   :  { %1680 = vmatpush1.bf16.xpose.msra.mxu0 %v1679_v14  ;;  %v372_v14 = vld [vmem:[%s3099_s1 + $0xb10] sm:$0xff]  ;;  %v231_v13 = vld [vmem:[%s3099_s1 + $0x6a8] sm:$0xff] }
  0xd9   :  { %1682 = vmatprep.subr.bf16.mxu0 %v1681_v16  ;;  %v27_v16 = vld [vmem:[%s3099_s1 + $0x48] sm:$0xff]  ;;  %v1699_v21 = vpack.c.bf16 %v396_v15, %v372_v14 }
  0xda   :  { %v1509_v22 = vpack.c.bf16 %v51_v17, %v27_v16  ;;  %v255_v14 = vld [vmem:[%s3099_s1 + $0x768] sm:$0xff] }
  0xdb   :  { %v1717_v18 = vpack.c.bf16 %v255_v14, %v231_v13  ;;  %v64_v13 = vld [vmem:[%s3099_s1 + $0x170] sm:$0xff]  ;;  %v77_v14 = vld [vmem:[%s3099_s1 + $0x1d8] sm:$0xff] }
  0xde   :  { %1492 = vmatpush1.bf16.xpose.msra.mxu1 %v1491_v25  ;;  %v50_v25 = vld [vmem:[%s3099_s1 + $0x100] sm:$0xff] }
  0xdf   :  { %1494 = vmatprep.subr.bf16.mxu1 %v1493_v27  ;;  %v62_v27 = vld [vmem:[%s3099_s1 + $0x160] sm:$0xff]  ;;  %v1511_v33 = vpack.c.bf16 %v50_v25, %v26_v24  ;;  %v291_v24 = vld [vmem:[%s3099_s1 + $0x888] sm:$0xff] }
  0xe0   :  { %1684 = vmatpush1.bf16.xpose.msra.mxu0 %v1683_v26  ;;  %v38_v26 = vld [vmem:[%s3099_s1 + $0xa0] sm:$0xff]  ;;  %v279_v25 = vld [vmem:[%s3099_s1 + $0x828] sm:$0xff] }
  0xe1   :  { %1686 = vmatprep.subr.bf16.mxu0 %v1685_v28  ;;  %v75_v28 = vld [vmem:[%s3099_s1 + $0x1c8] sm:$0xff]  ;;  %v1703_v35 = vpack.c.bf16 %v62_v27, %v38_v26 }
  0xe2   :  { %v1513_v39 = vpack.c.bf16 %v99_v29, %v75_v28  ;;  %v303_v26 = vld [vmem:[%s3099_s1 + $0x8e8] sm:$0xff] }
  0xe6   :  { %1496 = vmatpush1.bf16.xpose.msra.mxu1 %v1495_v40  ;;  %v1705_v40 = vpack.c.bf16 %v111_v32, %v87_v31  ;;  %v266_v31 = vld [vmem:[%s3099_s1 + $0x7c0] sm:$0xff] }
  0xe7   :  { %1498 = vmatprep.subr.bf16.mxu1 %v1497_v37  ;;  %v74_v37 = vld [vmem:[%s3099_s1 + $0x1c0] sm:$0xff] }
  0xe8   :  { %1688 = vmatpush1.bf16.xpose.msra.mxu0 %v1687_v41  ;;  %v445_v41 = vrot.slane %v1955_v54, %v1922_v44  ;;  %v86_v44 = vld [vmem:[%s3099_s1 + $0x220] sm:$0xff]  ;;  %v123_v54 = vld [vmem:[%s3099_s1 + $0x348] sm:$0xff] }
  0xe9   :  { %1690 = vmatprep.subr.bf16.mxu0 %v1689_v42  ;;  %v98_v42 = vld [vmem:[%s3099_s1 + $0x280] sm:$0xff]  ;;  %v1707_v52 = vpack.c.bf16 %v110_v45, %v86_v44  ;;  %v1517_v53 = vpack.c.bf16 %v147_v43, %v123_v54 }
  0xea   :  { %v1515_v48 = vpack.c.bf16 %v98_v42, %v74_v37  ;;  %v290_v32 = vld [vmem:[%s3099_s1 + $0x880] sm:$0xff] }
  0xeb   :  { %v314_v45 = vld [vmem:[%s3099_s1 + $0x940] sm:$0xff] }
  0xec   :  { %v338_v54 = vld [vmem:[%s3099_s1 + $0xa00] sm:$0xff] }
  0xed   :  { %v326_v43 = vld [vmem:[%s3099_s1 + $0x9a0] sm:$0xff] }
  0xee   :  { %1500 = vmatpush1.bf16.xpose.msra.mxu1 %v1499_v58  ;;  %v146_v58 = vld [vmem:[%s3099_s1 + $0x400] sm:$0xff] }
  0xef   :  { %1502 = vmatprep.subr.bf16.mxu1 %v1501_v61  ;;  %v158_v61 = vld [vmem:[%s3099_s1 + $0x460] sm:$0xff]  ;;  %v1519_v3 = vpack.c.bf16 %v146_v58, %v122_v57  ;;  %v1727_v57 = vpack.c.bf16 %v350_v46, %v326_v43  ;;  %v172_v46 = vld [vmem:[%s3099_s1 + $0x4d0] sm:$0xff] }
  0xf0   :  { %1692 = vmatpush1.bf16.xpose.msra.mxu0 %v1691_v60  ;;  %v134_v60 = vld [vmem:[%s3099_s1 + $0x3a0] sm:$0xff] }
  0xf1   :  { %1694 = vmatprep.subr.bf16.mxu0 %v1693_v62  ;;  %v171_v62 = vld [vmem:[%s3099_s1 + $0x4c8] sm:$0xff]  ;;  %v1711_v4 = vpack.c.bf16 %v158_v61, %v134_v60  ;;  %v362_v61 = vld [vmem:[%s3099_s1 + $0xac0] sm:$0xff] }
  0xf2   :  { %v1521_v5 = vpack.c.bf16 %v195_v0, %v171_v62  ;;  %v386_v62 = vld [vmem:[%s3099_s1 + $0xb80] sm:$0xff] }
  0xf3   :  { %v374_v0 = vld [vmem:[%s3099_s1 + $0xb20] sm:$0xff] }
  0xf6   :  { %1504 = vmatpush1.bf16.xpose.msra.mxu1 %v1503_v8  ;;  %v194_v8 = vld [vmem:[%s3099_s1 + $0x580] sm:$0xff] }
  0xf7   :  { %1506 = vmatprep.subr.bf16.mxu1 %v1505_v10  ;;  %v206_v10 = vld [vmem:[%s3099_s1 + $0x5e0] sm:$0xff]  ;;  %v1523_v15 = vpack.c.bf16 %v194_v8, %v170_v7  ;;  %v1731_v7 = vpack.c.bf16 %v398_v1, %v374_v0  ;;  %v220_v1 = vld [vmem:[%s3099_s1 + $0x650] sm:$0xff] }
  0xf8   :  { %1696 = vmatpush1.bf16.xpose.msra.mxu0 %v1695_v9  ;;  %v182_v9 = vld [vmem:[%s3099_s1 + $0x520] sm:$0xff] }
  0xf9   :  { %1698 = vmatprep.subr.bf16.mxu0 %v1697_v11  ;;  %v219_v11 = vld [vmem:[%s3099_s1 + $0x648] sm:$0xff]  ;;  %v1715_v16 = vpack.c.bf16 %v206_v10, %v182_v9  ;;  %v28_v10 = vld [vmem:[%s3099_s1 + $0x50] sm:$0xff] }
  0xfa   :  { %v1525_v17 = vpack.c.bf16 %v243_v12, %v219_v11  ;;  %v52_v11 = vld [vmem:[%s3099_s1 + $0x110] sm:$0xff] }
  0xfb   :  { %v40_v12 = vld [vmem:[%s3099_s1 + $0xb0] sm:$0xff] }
  0xfe   :  { %1508 = vmatpush1.bf16.xpose.msra.mxu1 %v1507_v20  ;;  %v242_v20 = vld [vmem:[%s3099_s1 + $0x700] sm:$0xff] }
  0xff   :  { %1510 = vmatprep.subr.bf16.mxu1 %v1509_v22  ;;  %v254_v22 = vld [vmem:[%s3099_s1 + $0x760] sm:$0xff]  ;;  %v1527_v27 = vpack.c.bf16 %v242_v20, %v218_v19  ;;  %v113_v19 = vld [vmem:[%s3099_s1 + $0x2f8] sm:$0xff]  ;;  %v1543_v20 = vpack.c.bf16 %v52_v11, %v28_v10 }
 0x100   :  { %1700 = vmatpush1.bf16.xpose.msra.mxu0 %v1699_v21  ;;  %v230_v21 = vld [vmem:[%s3099_s1 + $0x6a0] sm:$0xff] }
 0x101   :  { %1702 = vmatprep.subr.bf16.mxu0 %v1701_v23  ;;  %v267_v23 = vld [vmem:[%s3099_s1 + $0x7c8] sm:$0xff]  ;;  %v1719_v28 = vpack.c.bf16 %v254_v22, %v230_v21  ;;  %v489_v21 = vrot.slane %v2310_v55, %v2065_v51  ;;  %v1735_v22 = vpack.c.bf16 %v64_v13, %v40_v12  ;;  %v100_v51 = vld [vmem:[%s3099_s1 + $0x290] sm:$0xff] }
 0x102   :  { %v1529_v29 = vpack.c.bf16 %v291_v24, %v267_v23  ;;  %v268_v13 = vld [vmem:[%s3099_s1 + $0x7d0] sm:$0xff] }
 0x105   :  { %801 = vmatmul.mubr.f32.vlgmr.msra.gmra.mrb[0].mxu1 %v433_v30  ;;  %v1721_v30 = vpack.c.bf16 %v303_v26, %v279_v25  ;;  %v76_v26 = vld [vmem:[%s3099_s1 + $0x1d0] sm:$0xff] }
 0x106   :  { %1512 = vmatpush1.bf16.xpose.msra.mxu1 %v1511_v33  ;;  %870 = vmatprep.mubr.f32.mxu1 %v445_v41  ;;  %v278_v33 = vld [vmem:[%s3099_s1 + $0x820] sm:$0xff]  ;;  %v351_v41 = vld [vmem:[%s3099_s1 + $0xa68] sm:$0xff] }
 0x107   :  { %1221 = vmatmul.mubr.f32.vlgmr.msra.gmra.mrb[0].mxu0 %v481_v34  ;;  %1514 = vmatprep.subr.bf16.mxu1 %v1513_v39  ;;  %v302_v34 = vld [vmem:[%s3099_s1 + $0x8e0] sm:$0xff]  ;;  %v339_v39 = vld [vmem:[%s3099_s1 + $0xa08] sm:$0xff] }
 0x108   :  { %1704 = vmatpush1.bf16.xpose.msra.mxu0 %v1703_v35  ;;  %1290 = vmatprep.mubr.f32.mxu0 %v493_v50  ;;  %v315_v35 = vld [vmem:[%s3099_s1 + $0x948] sm:$0xff]  ;;  %v1531_v50 = vpack.c.bf16 %v290_v32, %v266_v31  ;;  %v1723_v37 = vpack.c.bf16 %v302_v34, %v278_v33  ;;  %v124_v34 = vld [vmem:[%s3099_s1 + $0x350] sm:$0xff] }
 0x109   :  { %1706 = vmatprep.subr.bf16.mxu0 %v1705_v40  ;;  %v327_v40 = vld [vmem:[%s3099_s1 + $0x9a8] sm:$0xff]  ;;  %v1533_v42 = vpack.c.bf16 %v339_v39, %v315_v35  ;;  %v148_v35 = vld [vmem:[%s3099_s1 + $0x410] sm:$0xff] }
 0x10a   :  { %v1725_v44 = vpack.c.bf16 %v351_v41, %v327_v40  ;;  %v136_v39 = vld [vmem:[%s3099_s1 + $0x3b0] sm:$0xff]  ;;  %v173_v41 = vld [vmem:[%s3099_s1 + $0x4d8] sm:$0xff] }
 0x10b   :  { %v160_v40 = vld [vmem:[%s3099_s1 + $0x470] sm:$0xff] }
 0x10e   :  { %1516 = vmatpush1.bf16.xpose.msra.mxu1 %v1515_v48  ;;  %v387_v48 = vld [vmem:[%s3099_s1 + $0xb88] sm:$0xff] }
 0x10f   :  { %1518 = vmatprep.subr.bf16.mxu1 %v1517_v53  ;;  %v399_v53 = vld [vmem:[%s3099_s1 + $0xbe8] sm:$0xff]  ;;  %v1537_v58 = vpack.c.bf16 %v387_v48, %v363_v47  ;;  %v196_v47 = vld [vmem:[%s3099_s1 + $0x590] sm:$0xff] }
 0x110   :  { %1708 = vmatpush1.bf16.xpose.msra.mxu0 %v1707_v52  ;;  %v375_v52 = vld [vmem:[%s3099_s1 + $0xb28] sm:$0xff]  ;;  %v184_v48 = vld [vmem:[%s3099_s1 + $0x530] sm:$0xff] }
 0x111   :  { %1710 = vmatprep.subr.bf16.mxu0 %v1709_v56  ;;  %v1535_v56 = vpack.c.bf16 %v338_v54, %v314_v45  ;;  %v1729_v60 = vpack.c.bf16 %v399_v53, %v375_v52  ;;  %v1743_v45 = vpack.c.bf16 %v160_v40, %v136_v39  ;;  %v208_v52 = vld [vmem:[%s3099_s1 + $0x5f0] sm:$0xff]  ;;  %v221_v53 = vld [vmem:[%s3099_s1 + $0x658] sm:$0xff] }
 0x112   :  { %v400_v39 = vld [vmem:[%s3099_s1 + $0xbf0] sm:$0xff] }
 0x116   :  { %1520 = vmatpush1.bf16.xpose.msra.mxu1 %v1519_v3  ;;  %v53_v3 = vld [vmem:[%s3099_s1 + $0x118] sm:$0xff] }
 0x117   :  { %1522 = vmatprep.subr.bf16.mxu1 %v1521_v5  ;;  %v65_v5 = vld [vmem:[%s3099_s1 + $0x178] sm:$0xff]  ;;  %v1541_v8 = vpack.c.bf16 %v53_v3, %v29_v2  ;;  %v244_v2 = vld [vmem:[%s3099_s1 + $0x710] sm:$0xff] }
 0x118   :  { %1712 = vmatpush1.bf16.xpose.msra.mxu0 %v1711_v4  ;;  %v41_v4 = vld [vmem:[%s3099_s1 + $0xb8] sm:$0xff]  ;;  %v232_v3 = vld [vmem:[%s3099_s1 + $0x6b0] sm:$0xff] }
 0x119   :  { %1714 = vmatprep.subr.bf16.mxu0 %v1713_v6  ;;  %v1539_v6 = vpack.c.bf16 %v386_v62, %v362_v61  ;;  %v1733_v9 = vpack.c.bf16 %v65_v5, %v41_v4  ;;  %v1747_v61 = vpack.c.bf16 %v208_v52, %v184_v48  ;;  %v256_v4 = vld [vmem:[%s3099_s1 + $0x770] sm:$0xff]  ;;  %v269_v5 = vld [vmem:[%s3099_s1 + $0x7d8] sm:$0xff] }
 0x11a   :  { %v1751_v10 = vpack.c.bf16 %v256_v4, %v232_v3 }
 0x11e   :  { %1524 = vmatpush1.bf16.xpose.msra.mxu1 %v1523_v15  ;;  %v101_v15 = vld [vmem:[%s3099_s1 + $0x298] sm:$0xff] }
 0x11f   :  { %1526 = vmatprep.subr.bf16.mxu1 %v1525_v17  ;;  %v1545_v23 = vpack.c.bf16 %v101_v15, %v77_v14  ;;  %v292_v14 = vld [vmem:[%s3099_s1 + $0x890] sm:$0xff] }
 0x120   :  { %1716 = vmatpush1.bf16.xpose.msra.mxu0 %v1715_v16  ;;  %v2905_v16 = vld [vmem:[%s3098_s0 + $0x8] sm:$0xff]  ;;  %v280_v15 = vld [vmem:[%s3099_s1 + $0x830] sm:$0xff] }
 0x121   :  { %1718 = vmatprep.subr.bf16.mxu0 %v1717_v18  ;;  %v441_v17 = vrot.slane %v2905_v16, %v2062_v49  ;;  %v89_v18 = vld [vmem:[%s3099_s1 + $0x238] sm:$0xff]  ;;  %v453_v25 = vrot.slane %v2905_v16, %v2086_v59  ;;  %v501_v49 = vrot.slane %v2310_v55, %v2097_v63  ;;  %v88_v59 = vld [vmem:[%s3099_s1 + $0x230] sm:$0xff] }
 0x122   :  { %v1737_v24 = vpack.c.bf16 %v113_v19, %v89_v18  ;;  %v112_v63 = vld [vmem:[%s3099_s1 + $0x2f0] sm:$0xff]  ;;  %v125_v55 = vld [vmem:[%s3099_s1 + $0x358] sm:$0xff] }
 0x123   :  { %v1739_v31 = vpack.c.bf16 %v112_v63, %v88_v59  ;;  %v317_v18 = vld [vmem:[%s3099_s1 + $0x958] sm:$0xff]  ;;  %v352_v59 = vld [vmem:[%s3099_s1 + $0xa70] sm:$0xff] }
 0x124   :  { %v341_v19 = vld [vmem:[%s3099_s1 + $0xa18] sm:$0xff] }
 0x125   :  { %v365_v63 = vld [vmem:[%s3099_s1 + $0xad8] sm:$0xff] }
 0x126   :  { %1528 = vmatpush1.bf16.xpose.msra.mxu1 %v1527_v27  ;;  %v149_v27 = vld [vmem:[%s3099_s1 + $0x418] sm:$0xff] }
 0x127   :  { %1530 = vmatprep.subr.bf16.mxu1 %v1529_v29  ;;  %v161_v29 = vld [vmem:[%s3099_s1 + $0x478] sm:$0xff]  ;;  %v1549_v32 = vpack.c.bf16 %v149_v27, %v125_v55 }
 0x128   :  { %1720 = vmatpush1.bf16.xpose.msra.mxu0 %v1719_v28  ;;  %v137_v28 = vld [vmem:[%s3099_s1 + $0x3b8] sm:$0xff] }
 0x129   :  { %1722 = vmatprep.subr.bf16.mxu0 %v1721_v30  ;;  %v1547_v30 = vpack.c.bf16 %v100_v51, %v76_v26  ;;  %v1741_v33 = vpack.c.bf16 %v161_v29, %v137_v28  ;;  %v340_v26 = vld [vmem:[%s3099_s1 + $0xa10] sm:$0xff]  ;;  %v389_v55 = vld [vmem:[%s3099_s1 + $0xb98] sm:$0xff] }
 0x12a   :  { %v328_v51 = vld [vmem:[%s3099_s1 + $0x9b0] sm:$0xff]  ;;  %v377_v27 = vld [vmem:[%s3099_s1 + $0xb38] sm:$0xff] }
 0x12b   :  { %v401_v28 = vld [vmem:[%s3099_s1 + $0xbf8] sm:$0xff] }
 0x12e   :  { %1532 = vmatpush1.bf16.xpose.msra.mxu1 %v1531_v50  ;;  %v197_v50 = vld [vmem:[%s3099_s1 + $0x598] sm:$0xff] }
 0x12f   :  { %1534 = vmatprep.subr.bf16.mxu1 %v1533_v42  ;;  %v209_v42 = vld [vmem:[%s3099_s1 + $0x5f8] sm:$0xff]  ;;  %v1553_v54 = vpack.c.bf16 %v197_v50, %v173_v41  ;;  %v449_v50 = vrot.slane %v2905_v16, %v2274_v36 }
 0x130   :  { %1724 = vmatpush1.bf16.xpose.msra.mxu0 %v1723_v37  ;;  %v185_v37 = vld [vmem:[%s3099_s1 + $0x538] sm:$0xff] }
 0x131   :  { %1726 = vmatprep.subr.bf16.mxu0 %v1725_v44  ;;  %v1551_v44 = vpack.c.bf16 %v148_v35, %v124_v34  ;;  %v1745_v43 = vpack.c.bf16 %v209_v42, %v185_v37  ;;  %v388_v34 = vld [vmem:[%s3099_s1 + $0xb90] sm:$0xff] }
 0x132   :  { %v376_v35 = vld [vmem:[%s3099_s1 + $0xb30] sm:$0xff] }
 0x133   :  { %v1763_v41 = vpack.c.bf16 %v400_v39, %v376_v35  ;;  %v1789_v37 = vld [vmem:[%s3098_s0 + $0x10] sm:$0xff] }
 0x134   :  { %v497_v42 = vrot.slane %v1789_v37, %v2277_v38 }
 0x136   :  { %1536 = vmatpush1.bf16.xpose.msra.mxu1 %v1535_v56  ;;  %v245_v56 = vld [vmem:[%s3099_s1 + $0x718] sm:$0xff] }
 0x137   :  { %1538 = vmatprep.subr.bf16.mxu1 %v1537_v58  ;;  %v257_v58 = vld [vmem:[%s3099_s1 + $0x778] sm:$0xff]  ;;  %v1557_v62 = vpack.c.bf16 %v245_v56, %v221_v53 }
 0x138   :  { %1728 = vmatpush1.bf16.xpose.msra.mxu0 %v1727_v57  ;;  %v233_v57 = vld [vmem:[%s3099_s1 + $0x6b8] sm:$0xff] }
 0x139   :  { %1730 = vmatprep.subr.bf16.mxu0 %v1729_v60  ;;  %v1555_v60 = vpack.c.bf16 %v196_v47, %v172_v46  ;;  %v1749_v0 = vpack.c.bf16 %v257_v58, %v233_v57 }
 0x13e   :  { %1540 = vmatpush1.bf16.xpose.msra.mxu1 %v1539_v6  ;;  %v293_v6 = vld [vmem:[%s3099_s1 + $0x898] sm:$0xff] }
 0x13f   :  { %1542 = vmatprep.subr.bf16.mxu1 %v1541_v8  ;;  %v305_v8 = vld [vmem:[%s3099_s1 + $0x8f8] sm:$0xff]  ;;  %v1561_v11 = vpack.c.bf16 %v293_v6, %v269_v5 }
 0x140   :  { %1732 = vmatpush1.bf16.xpose.msra.mxu0 %v1731_v7  ;;  %v281_v7 = vld [vmem:[%s3099_s1 + $0x838] sm:$0xff] }
 0x141   :  { %1734 = vmatprep.subr.bf16.mxu0 %v1733_v9  ;;  %v1559_v9 = vpack.c.bf16 %v244_v2, %v220_v1  ;;  %v1753_v12 = vpack.c.bf16 %v305_v8, %v281_v7 }
 0x145   :  { %871 = vmatmul.mubr.f32.vlgmr.msra.gmra.mrb[0].mxu1 %v441_v17  ;;  %v304_v17 = vld [vmem:[%s3099_s1 + $0x8f0] sm:$0xff] }
 0x146   :  { %1544 = vmatpush1.bf16.xpose.msra.mxu1 %v1543_v20  ;;  %940 = vmatprep.mubr.f32.mxu1 %v453_v25  ;;  %v329_v20 = vld [vmem:[%s3099_s1 + $0x9b8] sm:$0xff] }
 0x147   :  { %1291 = vmatmul.mubr.f32.vlgmr.msra.gmra.mrb[0].mxu0 %v489_v21  ;;  %1546 = vmatprep.subr.bf16.mxu1 %v1545_v23  ;;  %v353_v21 = vld [vmem:[%s3099_s1 + $0xa78] sm:$0xff]  ;;  %v1755_v23 = vpack.c.bf16 %v304_v17, %v280_v15 }
 0x148   :  { %1736 = vmatpush1.bf16.xpose.msra.mxu0 %v1735_v22  ;;  %1360 = vmatprep.mubr.f32.mxu0 %v501_v49  ;;  %v1563_v22 = vpack.c.bf16 %v292_v14, %v268_v13  ;;  %v1757_v25 = vpack.c.bf16 %v353_v21, %v329_v20  ;;  %v316_v49 = vld [vmem:[%s3099_s1 + $0x950] sm:$0xff] }
 0x149   :  { %1738 = vmatprep.subr.bf16.mxu0 %v1737_v24  ;;  %v1565_v24 = vpack.c.bf16 %v341_v19, %v317_v18  ;;  %v1567_v29 = vpack.c.bf16 %v340_v26, %v316_v49 }
 0x14e   :  { %1548 = vmatpush1.bf16.xpose.msra.mxu1 %v1547_v30  ;;  %v1759_v30 = vpack.c.bf16 %v352_v59, %v328_v51 }
 0x14f   :  { %1550 = vmatprep.subr.bf16.mxu1 %v1549_v32  ;;  %v1761_v32 = vpack.c.bf16 %v401_v28, %v377_v27 }
 0x150   :  { %1740 = vmatpush1.bf16.xpose.msra.mxu0 %v1739_v31  ;;  %v1569_v31 = vpack.c.bf16 %v389_v55, %v365_v63 }
 0x151   :  { %1742 = vmatprep.subr.bf16.mxu0 %v1741_v33  ;;  %v364_v33 = vld [vmem:[%s3099_s1 + $0xad0] sm:$0xff]  ;;  %s1814_s1 = smov [#allocation2]  }
 0x152   :  { %v1571_v40 = vpack.c.bf16 %v388_v34, %v364_v33  ;;  %s1373_s9 = sshll.u32 %s1814_s1, 4  ;;  %s1374_s9 = int_to_ptr.vmem [resolvable:$true] %s1373_s9 }
 0x153   :  { %s1790_s10 = scalar_lea.vmem %s1374_s9, 16  ;;  %s1794_s0 = scalar_lea.vmem %s1374_s9, 32 }
 0x154   :  { %p1791_p0 = scmp.ne.s32.totalorder %s1374_s9, %s1790_s10  ;;  %p1795_p1 = scmp.lt.s32.totalorder %s1374_s9, %s1374_s9 }
 0x155   :  { %p1796_p2 = scmp.lt.s32.totalorder %s1794_s0, %s1790_s10 }
 0x156   :  { %1552 = vmatpush1.bf16.xpose.msra.mxu1 %v1551_v44  ;;  %v402_v44 = vld [vmem:[%s3100_s2] sm:$0x1] }
 0x157   :  { %1554 = vmatprep.subr.bf16.mxu1 %v1553_v54  ;;  %p1797_p3 = por %p1796_p2, %p1795_p1 }
 0x158   :  { %1744 = vmatpush1.bf16.xpose.msra.mxu0 %v1743_v45 }
 0x159   :  { %1746 = vmatprep.subr.bf16.mxu0 %v1745_v43  ;;  %p1798_p4 = pnand %p1797_p3, %p1791_p0 }
 0x15e   :  { %1556 = vmatpush1.bf16.xpose.msra.mxu1 %v1555_v60 }
 0x15f   :  { %1558 = vmatprep.subr.bf16.mxu1 %v1557_v62 }
 0x160   :  { %1748 = vmatpush1.bf16.xpose.msra.mxu0 %v1747_v61 }
 0x161   :  { %1750 = vmatprep.subr.bf16.mxu0 %v1749_v0 }
 0x166   :  { %1560 = vmatpush1.bf16.xpose.msra.mxu1 %v1559_v9 }
 0x167   :  { %1562 = vmatprep.subr.bf16.mxu1 %v1561_v11 }
 0x168   :  { %1752 = vmatpush1.bf16.xpose.msra.mxu0 %v1751_v10 }
 0x169   :  { %1754 = vmatprep.subr.bf16.mxu0 %v1753_v12 }
 0x16e   :  { %1564 = vmatpush1.bf16.xpose.msra.mxu1 %v1563_v22 }
 0x16f   :  { %1566 = vmatprep.subr.bf16.mxu1 %v1565_v24 }
 0x170   :  { %1756 = vmatpush1.bf16.xpose.msra.mxu0 %v1755_v23 }
 0x171   :  { %1758 = vmatprep.subr.bf16.mxu0 %v1757_v25 }
 0x176   :  { %1568 = vmatpush1.bf16.xpose.msra.mxu1 %v1567_v29 }
 0x177   :  { %1570 = vmatprep.subr.bf16.mxu1 %v1569_v31 }
 0x178   :  { %1760 = vmatpush1.bf16.xpose.msra.mxu0 %v1759_v30 }
 0x179   :  { %1762 = vmatprep.subr.bf16.mxu0 %v1761_v32 }
 0x17e   :  { %1572 = vmatpush1.bf16.xpose.msra.mxu1 %v1571_v40 }
 0x180   :  { %1764 = vmatpush1.bf16.xpose.msra.mxu0 %v1763_v41 }
 0x185   :  { %941 = vmatmul.mubr.f32.vlgmr.msra.gmra.mrb[0].mxu1 %v449_v50 }
 0x187   :  { %1361 = vmatmul.mubr.f32.vlgmr.msra.gmra.mrb[0].mxu0 %v497_v42 }
 0x258   :  { %v942_v45 = vpop.f32.mrb[0].mxu1 }
 0x259   :  { %v1765_v54 = vadd.f32 %v942_v45, %v402_v44  ;;  %v944_v46 = vpop.f32.mrb[1].mxu1 }
 0x25a   :  { %v1362_v43 = vpop.f32.mrb[0].mxu0 }
 0x25b   :  { %v1364_v47 = vpop.f32.mrb[1].mxu0  ;;  %v1766_v36 = vadd.f32 %v1765_v54, %v1362_v43 }
 0x25d   :  { %1366 = vst [vmem:[#allocation2] sm:$0x1] %v1766_v36 }
 0x25e   :  { %1801 = shalt.err (!%p1798_p4)
}
 0x25f   :  { %s1802_s12 = scalar_lea.hbm %s3101_s3, 16 }
 0x260   :  { %p1803_p5 = scmp.ne.s32.totalorder %s3101_s3, %s1802_s12  ;;  %p1806_p6 = scmp.lt.u32.totalorder %s1802_s12, %s3101_s3 }
 0x262   :  { %p1808_p7 = pnand %p1806_p6, %p1803_p5 }
 0x264   :  { %1811 = shalt.err (!%p1808_p7)
}
 0x265   :  { %1376 = dma.vmem_to_hbm [thread:$0]  %s1374_s9, 16, %s3101_s3, [#allocation3]  }
 0x266   :  { %1812 = dma.done.wait [#allocation3], 16  }
 0x267   :  { %1813 = vsyncadd [#allocation3], 4294967280 }
 0x268   :  { %1380 = vsyncpa [#allocation3], 1 }

</bundles_post_ra>
